<compile_context>
chip_gen: v7x
topology: tpu7x:2x2x1
jax: 0.10.0
libtpu: 0.0.40
codegen_flags: <defaults>
</compile_context>

<pallas_src>
import jax
import jax.numpy as jnp
import numpy as np
from jax import lax
from jax.experimental import pallas as pl
from jax.experimental.pallas import tpu as pltpu

K_GAUSS = 16                        # number of gaussian basis functions
N_ATOM = 5                          # atoms per residue
MAX_AA = 22                         # max amino-acid types
N_PAIR = N_ATOM * N_ATOM            # 25 atom pairs per edge
N_GBF = N_PAIR * K_GAUSS            # 400 gaussian features per edge
N_PACK = 2 * N_ATOM * 3 + N_ATOM + 1    # 36 packed input columns per edge
SEL_LANE = 128                      # each selection block gets its own lane tile
SEL_W = 5 * SEL_LANE                # 640 fused selection-output columns
PI = 3.1415926                      # constant used by the torch module


def _build_static_matrices():
    """Static one-hot selection / expansion matrices (exact 0 / +-1 values).

    sel: packed(36) -> fused(640).  Lane block c*128 + p (c in 0..4, pair
    p=a*5+b) holds: c<3  -> coord-c difference (neighbor atom a - self atom b),
    c==3 -> neighbor-gathered mask of atom a, c==4 -> mask of atom b.
    expk: pair(25) -> gbf(400) "repeat each pair column K times" expansion.
    """
    sel = np.zeros((N_PACK, SEL_W), np.float32)
    for a in range(N_ATOM):
        for b in range(N_ATOM):
            p = a * N_ATOM + b
            for c in range(3):
                sel[a * 3 + c, c * SEL_LANE + p] = 1.0        # + neighbor coords (cols 0:15)
                sel[15 + b * 3 + c, c * SEL_LANE + p] = -1.0  # - self coords     (cols 15:30)
            sel[30 + a, 3 * SEL_LANE + p] = 1.0               # atom mask a       (cols 30:35)
            sel[30 + b, 4 * SEL_LANE + p] = 1.0               # atom mask b
    expk = np.zeros((N_PAIR, N_GBF), np.float32)
    for p in range(N_PAIR):
        expk[p, p * K_GAUSS:(p + 1) * K_GAUSS] = 1.0
    return sel, expk


def _gaussian_kernel(pk_ref, sel_ref, expk_ref, aff_ref, gst_ref, gbf_ref):
    pk = pk_ref[0]                                                     # (TM, 36)

    # ONE fused one-hot selection matmul (MXU, exact f32 via HIGHEST precision):
    # (TM,36) @ (36,640) -> (TM,640); 128-lane-aligned slices back out.
    sel_out = jnp.dot(pk, sel_ref[...],
                      preferred_element_type=jnp.float32,
                      precision=lax.Precision.HIGHEST)
    dx = sel_out[:, 0 * SEL_LANE:0 * SEL_LANE + N_PAIR]                # (TM, 25)
    dy = sel_out[:, 1 * SEL_LANE:1 * SEL_LANE + N_PAIR]
    dz = sel_out[:, 2 * SEL_LANE:2 * SEL_LANE + N_PAIR]
    ma = sel_out[:, 3 * SEL_LANE:3 * SEL_LANE + N_PAIR]
    mb = sel_out[:, 4 * SEL_LANE:4 * SEL_LANE + N_PAIR]

    dist = jnp.sqrt(dx * dx + dy * dy + dz * dz)                       # (TM, 25)
    mul25 = aff_ref[0:1, :]                                            # (1, 25)
    bias25 = aff_ref[1:2, :]
    x25 = (mul25 * dist + bias25) * (ma * mb)                          # (TM, 25)

    # Expand to lane-dense (TM, 400): column p*K+k holds x25[:, p] (one-hot MXU).
    x400 = jnp.dot(x25, expk_ref[...],
                   preferred_element_type=jnp.float32,
                   precision=lax.Precision.HIGHEST)

    mean = gst_ref[0:1, :]                                             # (1, 400)
    inv_std_h = gst_ref[1:2, :]                                        # 1/(std*sqrt(2))
    log_coef = gst_ref[2:3, :]                                         # log(1/(sqrt(2pi)*std))
    u = (x400 - mean) * inv_std_h
    g = jnp.exp(log_coef - u * u)                                      # coef folded into exponent

    matt = pk[:, 35:36]                                                # (TM, 1) attend mask
    gbf_ref[0] = (g * matt).astype(gbf_ref.dtype)


def _choose_tile(M, tile_m_max):
    """Pick edge-tile TM, preferring M_pad == M (no pad rows, no post-slice copy)."""
    tile_m_max = max(8, int(tile_m_max))
    if M <= tile_m_max:
        return M, M                                  # single tile (== full extent)
    n_min = pl.cdiv(M, tile_m_max)
    for nt in range(n_min, 4 * n_min + 1):           # exact split, multiple-of-8 TM
        if M % nt == 0 and (M // nt) % 8 == 0:
            return M // nt, M
    tm = (tile_m_max // 8) * 8                       # rare fallback: pad
    return tm, pl.cdiv(M, tm) * tm


def gaussian_layer_forward(params, aa, X, E_idx, mask_atoms, mask_attend, *,
                           tile_m=2048, out_dtype=jnp.float32,
                           vmem_limit_bytes=32 * 1024 * 1024):
    """Pallas implementation of GaussianLayer.forward.

    aa: (B,N) int; X: (B,N,5,3) f32; E_idx: (B,N,Knbr) int;
    mask_atoms: (B,N,5) f32; mask_attend: (B,N,Knbr) f32.
    Returns gbf (B,N,Knbr,400) and feat_aapair (B,N,Knbr,16).

    tile_m: max edge rows per grid step.  2048 fits the 32 MiB scoped-VMEM
    limit below on every chip (v7x included).  On v5e/v6e (128 MiB VMEM) you
    may use tile_m=4096 with vmem_limit_bytes=64<<20; do not on v7x.
    out_dtype: jnp.bfloat16 halves the dominant HBM write traffic on v6e/v7x
    if the downstream consumer tolerates it (elementwise math stays f32).
    """
    B, N, A, _ = X.shape
    Knbr = E_idx.shape[-1]
    M = N * Knbr

    aa = aa.astype(jnp.int32)
    E_idx = E_idx.astype(jnp.int32)

    # ---- aa-pair embedding lookup (data-dependent gather, plain-JAX glue) ----
    aa_pair = ((aa[:, :, None] + 1) % MAX_AA) * MAX_AA + ((aa[:, None, :] + 1) % MAX_AA)
    aa_pair = jnp.maximum(aa_pair, 21)
    aa_pair = jnp.where(aa_pair % MAX_AA == 0, 21, aa_pair)
    aa_pair_nbr = jnp.take_along_axis(aa_pair, E_idx, axis=2)           # (B,N,Knbr)
    feat = params["aa_pair_w"][aa_pair_nbr] * mask_attend[..., None].astype(jnp.float32)

    # ---- pack all per-edge inputs into one (B, M, 36) array (1 DMA / step) ----
    idx_flat = E_idx.reshape(B, M)
    X_flat = X.reshape(B, N, A * 3).astype(jnp.float32)                 # (B,N,15)
    nbr_X = jnp.take_along_axis(X_flat, idx_flat[:, :, None], axis=1)   # (B,M,15)
    self_X = jnp.repeat(X_flat, Knbr, axis=1)                           # (B,M,15)
    mask_nbr = jnp.take_along_axis(mask_atoms.astype(jnp.float32),
                                   idx_flat[:, :, None], axis=1)        # (B,M,5)
    mask_att = mask_attend.reshape(B, M, 1).astype(jnp.float32)         # (B,M,1)
    packed = jnp.concatenate([nbr_X, self_X, mask_nbr, mask_att], axis=-1)

    # ---- tile the edge axis; prefer an exact split (M_pad == M) ----
    TM, M_pad = _choose_tile(M, tile_m)
    if M_pad != M:
        packed = jnp.pad(packed, ((0, 0), (0, M_pad - M), (0, 0)))       # zero-masked rows
    n_mtiles = M_pad // TM

    # ---- constants: fused one-hot matrices + hoisted gaussian normalization ----
    sel_np, expk_np = _build_static_matrices()
    sel = jnp.asarray(sel_np)                                           # (36,640)
    expk = jnp.asarray(expk_np)                                         # (25,400)
    aff = jnp.stack([params["mul_w"].reshape(N_PAIR),
                     params["bias_w"].reshape(N_PAIR)], axis=0).astype(jnp.float32)
    mean = params["means_w"].reshape(K_GAUSS).astype(jnp.float32)
    std = jnp.abs(params["stds_w"].reshape(K_GAUSS).astype(jnp.float32)) + 0.01
    inv_std_h = 1.0 / (std * np.sqrt(2.0))                              # sqrt(0.5) folded in
    log_coef = -jnp.log(std * np.sqrt(2.0 * PI))                        # coef folded into exponent
    gst = jnp.stack([jnp.tile(mean, N_PAIR),
                     jnp.tile(inv_std_h, N_PAIR),
                     jnp.tile(log_coef, N_PAIR)], axis=0)               # (3,400)

    gbf = pl.pallas_call(
        _gaussian_kernel,
        grid=(B, n_mtiles),
        in_specs=[
            pl.BlockSpec((1, TM, N_PACK), lambda b, m: (b, m, 0)),      # packed edges
            pl.BlockSpec((N_PACK, SEL_W), lambda b, m: (0, 0)),         # fused selection mat
            pl.BlockSpec((N_PAIR, N_GBF), lambda b, m: (0, 0)),         # 25->400 expansion
            pl.BlockSpec((2, N_PAIR), lambda b, m: (0, 0)),             # mul / bias
            pl.BlockSpec((3, N_GBF), lambda b, m: (0, 0)),              # mean / 1/(std*sqrt2) / log coef
        ],
        out_specs=pl.BlockSpec((1, TM, N_GBF), lambda b, m: (b, m, 0)),
        out_shape=jax.ShapeDtypeStruct((B, M_pad, N_GBF), out_dtype),
        compiler_params=pltpu.CompilerParams(
            dimension_semantics=("parallel", "parallel"),
            vmem_limit_bytes=vmem_limit_bytes),
    )(packed, sel, expk, aff, gst)

    # reshape back to the PyTorch output layout (free bitcast when M_pad == M)
    if M_pad != M:
        gbf = gbf[:, :M, :]
    gbf = gbf.reshape(B, N, Knbr, N_GBF)
    return gbf, feat


def reference_forward(params, aa, X, E_idx, mask_atoms, mask_attend):
    """Pure-JAX transcription of the PyTorch forward (for verification)."""
    B, N, A, _ = X.shape
    Knbr = E_idx.shape[-1]
    aa = aa.astype(jnp.int32)
    E_idx = E_idx.astype(jnp.int32)
    aa_pair = ((aa[:, :, None] + 1) % MAX_AA) * MAX_AA + ((aa[:, None, :] + 1) % MAX_AA)
    aa_pair = jnp.maximum(aa_pair, 21)
    aa_pair = jnp.where(aa_pair % MAX_AA == 0, 21, aa_pair)
    aa_pair_nbr = jnp.take_along_axis(aa_pair, E_idx, axis=2)
    feat_aapair = params["aa_pair_w"][aa_pair_nbr]                       # (B,N,Knbr,K)

    X_flat = X.reshape(B, N, A * 3)
    idx_flat = E_idx.reshape(B, N * Knbr)
    nbr = jnp.take_along_axis(X_flat, idx_flat[:, :, None],
                              axis=1).reshape(B, N, Knbr, A, 3)
    delta = nbr[:, :, :, :, None, :] - X[:, :, None, None, :, :]
    D = jnp.sqrt(jnp.sum(delta * delta, axis=-1))                        # (B,N,Knbr,5,5)
    mul = params["mul_w"].reshape(A, A)
    bias = params["bias_w"].reshape(A, A)
    x = mul * D + bias
    m_nbr = jnp.take_along_axis(mask_atoms, idx_flat[:, :, None],
                                axis=1).reshape(B, N, Knbr, A)
    mask_new = m_nbr[:, :, :, None, :] * m_nbr[:, :, :, :, None]
    x = x * mask_new
    mean = params["means_w"].reshape(-1)
    std = jnp.abs(params["stds_w"].reshape(-1)) + 0.01
    a_const = (2.0 * PI) ** 0.5
    g = jnp.exp(-0.5 * ((x[..., None] - mean) / std) ** 2) / (a_const * std)
    gbf = g.reshape(B, N, Knbr, A * A * K_GAUSS)
    return gbf * mask_attend[..., None], feat_aapair * mask_attend[..., None]


def _make_inputs(key, B, N, Knbr):
    kd1, kd2, kd3, kd4, kd5 = jax.random.split(key, 5)
    aa = jax.random.randint(kd1, (B, N), 0, MAX_AA, dtype=jnp.int32)
    X = jax.random.normal(kd2, (B, N, N_ATOM, 3), jnp.float32)
    E_idx = jax.random.randint(kd3, (B, N, Knbr), 0, N, dtype=jnp.int32)
    mask_atoms = (jax.random.uniform(kd4, (B, N, N_ATOM)) > 0.2).astype(jnp.float32)
    mask_attend = (jax.random.uniform(kd5, (B, N, Knbr)) > 0.2).astype(jnp.float32)
    return aa, X, E_idx, mask_atoms, mask_attend


if __name__ == "__main__":
    key = jax.random.PRNGKey(0)
    kp1, kp2, kp3, kp4, kp5, kdat, kdat2 = jax.random.split(key, 7)

    # deterministic parameter init (shapes from GaussianLayer.__init__)
    params = {
        "means_w": jax.random.normal(kp1, (1, K_GAUSS), jnp.float32),
        "stds_w": jax.random.normal(kp2, (1, K_GAUSS), jnp.float32),
        "mul_w": jax.random.normal(kp3, (N_PAIR, 1), jnp.float32),
        "bias_w": jax.random.normal(kp4, (N_PAIR, 1), jnp.float32),
        "aa_pair_w": jax.random.normal(
            kp5, (MAX_AA * MAX_AA, K_GAUSS), jnp.float32).at[21].set(0.0),  # padding_idx=21
    }

    # --- small deterministic inputs (B=2, N=8, Knbr=4 -> M=32 edges) ---
    B, N, Knbr = 2, 8, 4
    aa, X, E_idx, mask_atoms, mask_attend = _make_inputs(kdat, B, N, Knbr)
    gbf_ref, feat_ref = reference_forward(params, aa, X, E_idx, mask_atoms, mask_attend)

    # 1) default config: single tile per batch (TM == M), f32 output
    gbf, feat = gaussian_layer_forward(params, aa, X, E_idx, mask_atoms, mask_attend)
    gbf = jax.block_until_ready(gbf)
    feat = jax.block_until_ready(feat)
    np.testing.assert_allclose(np.asarray(gbf), np.asarray(gbf_ref), rtol=1e-4, atol=1e-5)
    np.testing.assert_allclose(np.asarray(feat), np.asarray(feat_ref), rtol=1e-4, atol=1e-5)

    # 2) multi-tile exact-split path (M=32, tile_m=16 -> 2 tiles, M_pad == M)
    gbf2, _ = gaussian_layer_forward(params, aa, X, E_idx, mask_atoms, mask_attend,
                                     tile_m=16)
    gbf2 = jax.block_until_ready(gbf2)
    np.testing.assert_allclose(np.asarray(gbf2), np.asarray(gbf_ref), rtol=1e-4, atol=1e-5)

    # 3) padded-remainder fallback (N=9 -> M=36 has no multiple-of-8 divisor <= 16)
    aa3, X3, E3, ma3, mt3 = _make_inputs(kdat2, 2, 9, 4)
    gbf_ref3, _ = reference_forward(params, aa3, X3, E3, ma3, mt3)
    gbf3, _ = gaussian_layer_forward(params, aa3, X3, E3, ma3, mt3, tile_m=16)
    gbf3 = jax.block_until_ready(gbf3)
    np.testing.assert_allclose(np.asarray(gbf3), np.asarray(gbf_ref3), rtol=1e-4, atol=1e-5)

    # 4) optional bf16-output path (halves HBM write traffic; loose tolerance)
    gbf4, _ = gaussian_layer_forward(params, aa, X, E_idx, mask_atoms, mask_attend,
                                     out_dtype=jnp.bfloat16)
    gbf4 = jax.block_until_ready(gbf4)
    np.testing.assert_allclose(np.asarray(gbf4, dtype=np.float32), np.asarray(gbf_ref),
                               rtol=5e-2, atol=5e-2)

    print("KERNEL_OK")
</pallas_src>

<mosaic_0001>
module attributes {stable_mosaic.version = 11 : i64} {
  func.func @_gaussian_kernel(%arg0: i32, %arg1: i32, %arg2: memref<1x32x36xf32, #tpu.memory_space<vmem>>, %arg3: memref<36x640xf32, #tpu.memory_space<vmem>>, %arg4: memref<25x400xf32, #tpu.memory_space<vmem>>, %arg5: memref<2x25xf32, #tpu.memory_space<vmem>>, %arg6: memref<3x400xf32, #tpu.memory_space<vmem>>, %arg7: memref<1x32x400xf32, #tpu.memory_space<vmem>>) attributes {dimension_semantics = [#tpu.dimension_semantics<parallel>, #tpu.dimension_semantics<parallel>], iteration_bounds = array<i64: 2, 1>, scalar_prefetch = 0 : i64, scratch_operands = 0 : i64, tpu.core_type = #tpu.core_type<tc>, window_params = [{transform_indices = @transform_0, window_bounds = array<i64: 1, 32, 36>}, {pipeline_mode = #tpu.pipeline_mode<synchronous>, transform_indices = @transform_1, window_bounds = array<i64: 36, 640>}, {pipeline_mode = #tpu.pipeline_mode<synchronous>, transform_indices = @transform_2, window_bounds = array<i64: 25, 400>}, {pipeline_mode = #tpu.pipeline_mode<synchronous>, transform_indices = @transform_3, window_bounds = array<i64: 2, 25>}, {pipeline_mode = #tpu.pipeline_mode<synchronous>, transform_indices = @transform_4, window_bounds = array<i64: 3, 400>}, {transform_indices = @transform_5, window_bounds = array<i64: 1, 32, 400>}]} {
    %c0 = arith.constant 0 : index
    %c0_0 = arith.constant 0 : index
    %c0_1 = arith.constant 0 : index
    %0 = vector.load %arg2[%c0, %c0_0, %c0_1] : memref<1x32x36xf32, #tpu.memory_space<vmem>>, vector<1x32x36xf32>
    %1 = vector.shape_cast %0 : vector<1x32x36xf32> to vector<32x36xf32>
    %c0_2 = arith.constant 0 : index
    %c0_3 = arith.constant 0 : index
    %2 = vector.load %arg3[%c0_2, %c0_3] : memref<36x640xf32, #tpu.memory_space<vmem>>, vector<36x640xf32>
    %cst = arith.constant dense<0.000000e+00> : vector<32x640xf32>
    %3 = tpu.matmul %1, %2, %cst {dimension_numbers = #tpu.dot_dimension_numbers<[1], [0], [0], [1], [0, 0, 1, 1], [], []>, precision = #tpu.contract_precision<fp32>} : vector<32x36xf32>, vector<36x640xf32>, vector<32x640xf32> -> vector<32x640xf32>
    %4 = vector.extract_strided_slice %3 {offsets = [0, 0], sizes = [32, 25], strides = [1, 1]} : vector<32x640xf32> to vector<32x25xf32>
    %5 = vector.extract_strided_slice %3 {offsets = [0, 128], sizes = [32, 25], strides = [1, 1]} : vector<32x640xf32> to vector<32x25xf32>
    %6 = vector.extract_strided_slice %3 {offsets = [0, 256], sizes = [32, 25], strides = [1, 1]} : vector<32x640xf32> to vector<32x25xf32>
    %7 = vector.extract_strided_slice %3 {offsets = [0, 384], sizes = [32, 25], strides = [1, 1]} : vector<32x640xf32> to vector<32x25xf32>
    %8 = vector.extract_strided_slice %3 {offsets = [0, 512], sizes = [32, 25], strides = [1, 1]} : vector<32x640xf32> to vector<32x25xf32>
    %9 = arith.mulf %4, %4 : vector<32x25xf32>
    %10 = arith.mulf %5, %5 : vector<32x25xf32>
    %11 = arith.addf %9, %10 : vector<32x25xf32>
    %12 = arith.mulf %6, %6 : vector<32x25xf32>
    %13 = arith.addf %11, %12 : vector<32x25xf32>
    %14 = math.sqrt %13 : vector<32x25xf32>
    %c0_4 = arith.constant 0 : index
    %c0_5 = arith.constant 0 : index
    %15 = vector.load %arg5[%c0_4, %c0_5] : memref<2x25xf32, #tpu.memory_space<vmem>>, vector<1x25xf32>
    %c1 = arith.constant 1 : index
    %c0_6 = arith.constant 0 : index
    %16 = vector.load %arg5[%c1, %c0_6] : memref<2x25xf32, #tpu.memory_space<vmem>>, vector<1x25xf32>
    %17 = vector.broadcast %15 : vector<1x25xf32> to vector<32x25xf32>
    %18 = arith.mulf %17, %14 : vector<32x25xf32>
    %19 = vector.broadcast %16 : vector<1x25xf32> to vector<32x25xf32>
    %20 = arith.addf %18, %19 : vector<32x25xf32>
    %21 = arith.mulf %7, %8 : vector<32x25xf32>
    %22 = arith.mulf %20, %21 : vector<32x25xf32>
    %c0_7 = arith.constant 0 : index
    %c0_8 = arith.constant 0 : index
    %23 = vector.load %arg4[%c0_7, %c0_8] : memref<25x400xf32, #tpu.memory_space<vmem>>, vector<25x400xf32>
    %cst_9 = arith.constant dense<0.000000e+00> : vector<32x400xf32>
    %24 = tpu.matmul %22, %23, %cst_9 {dimension_numbers = #tpu.dot_dimension_numbers<[1], [0], [0], [1], [0, 0, 1, 1], [], []>, precision = #tpu.contract_precision<fp32>} : vector<32x25xf32>, vector<25x400xf32>, vector<32x400xf32> -> vector<32x400xf32>
    %c0_10 = arith.constant 0 : index
    %c0_11 = arith.constant 0 : index
    %25 = vector.load %arg6[%c0_10, %c0_11] : memref<3x400xf32, #tpu.memory_space<vmem>>, vector<1x400xf32>
    %c1_12 = arith.constant 1 : index
    %c0_13 = arith.constant 0 : index
    %26 = vector.load %arg6[%c1_12, %c0_13] : memref<3x400xf32, #tpu.memory_space<vmem>>, vector<1x400xf32>
    %c2 = arith.constant 2 : index
    %c0_14 = arith.constant 0 : index
    %27 = vector.load %arg6[%c2, %c0_14] : memref<3x400xf32, #tpu.memory_space<vmem>>, vector<1x400xf32>
    %28 = vector.broadcast %25 : vector<1x400xf32> to vector<32x400xf32>
    %29 = arith.subf %24, %28 : vector<32x400xf32>
    %30 = vector.broadcast %26 : vector<1x400xf32> to vector<32x400xf32>
    %31 = arith.mulf %29, %30 : vector<32x400xf32>
    %32 = arith.mulf %31, %31 : vector<32x400xf32>
    %33 = vector.broadcast %27 : vector<1x400xf32> to vector<32x400xf32>
    %34 = arith.subf %33, %32 : vector<32x400xf32>
    %35 = math.exp %34 : vector<32x400xf32>
    %36 = vector.extract_strided_slice %1 {offsets = [0, 35], sizes = [32, 1], strides = [1, 1]} : vector<32x36xf32> to vector<32x1xf32>
    %37 = vector.broadcast %36 : vector<32x1xf32> to vector<32x400xf32>
    %38 = arith.mulf %35, %37 : vector<32x400xf32>
    %c0_15 = arith.constant 0 : index
    %c0_16 = arith.constant 0 : index
    %c0_17 = arith.constant 0 : index
    %39 = vector.load %arg7[%c0_15, %c0_16, %c0_17] : memref<1x32x400xf32, #tpu.memory_space<vmem>>, vector<1x32x400xf32>
    %40 = vector.shape_cast %39 : vector<1x32x400xf32> to vector<32x400xf32>
    %41 = vector.shape_cast %38 : vector<32x400xf32> to vector<1x32x400xf32>
    tpu.vector_store %arg7[%c0_15, %c0_16, %c0_17], %41 {strides = array<i32>} : memref<1x32x400xf32, #tpu.memory_space<vmem>>, vector<1x32x400xf32>,
    return
  }
  func.func @transform_0(%arg0: i32, %arg1: i32) -> (i32, i32, i32) {
    %c0_i32 = arith.constant 0 : i32
    %c0_i32_0 = arith.constant 0 : i32
    return %arg0, %arg1, %c0_i32 : i32, i32, i32
  }
  func.func @transform_1(%arg0: i32, %arg1: i32) -> (i32, i32) {
    %c0_i32 = arith.constant 0 : i32
    %c0_i32_0 = arith.constant 0 : i32
    %c0_i32_1 = arith.constant 0 : i32
    return %c0_i32, %c0_i32_0 : i32, i32
  }
  func.func @transform_2(%arg0: i32, %arg1: i32) -> (i32, i32) {
    %c0_i32 = arith.constant 0 : i32
    %c0_i32_0 = arith.constant 0 : i32
    %c0_i32_1 = arith.constant 0 : i32
    return %c0_i32, %c0_i32_0 : i32, i32
  }
  func.func @transform_3(%arg0: i32, %arg1: i32) -> (i32, i32) {
    %c0_i32 = arith.constant 0 : i32
    %c0_i32_0 = arith.constant 0 : i32
    %c0_i32_1 = arith.constant 0 : i32
    return %c0_i32, %c0_i32_0 : i32, i32
  }
  func.func @transform_4(%arg0: i32, %arg1: i32) -> (i32, i32) {
    %c0_i32 = arith.constant 0 : i32
    %c0_i32_0 = arith.constant 0 : i32
    %c0_i32_1 = arith.constant 0 : i32
    return %c0_i32, %c0_i32_0 : i32, i32
  }
  func.func @transform_5(%arg0: i32, %arg1: i32) -> (i32, i32, i32) {
    %c0_i32 = arith.constant 0 : i32
    %c0_i32_0 = arith.constant 0 : i32
    return %arg0, %arg1, %c0_i32 : i32, i32, i32
  }
}

</mosaic_0001>

<bundles_post_ra>
// kernel: tpu_custom_call.1
= control target key start
LH: loop header
LB: loop body
LE: loop exit
PB: predicated region body
PF: predicated region fallthrough
CT: control target
= control target key end

     0   :  { %s6585_s0 = inlined_call_operand.hbm [shape: f32[2,32,36], index: 0, kind: input, shape index: {}]   ;;  %s6586_s1 = inlined_call_operand.hbm [shape: f32[36,640], index: 1, kind: input, shape index: {}]   ;;  %s6587_s2 = inlined_call_operand.hbm [shape: f32[25,400], index: 2, kind: input, shape index: {}]   ;;  %s6588_s3 = inlined_call_operand.vmem [shape: f32[2,25], index: 3, kind: input, shape index: {}]   ;;  %s6589_s4 = inlined_call_operand.hbm [shape: f32[3,400], index: 4, kind: input, shape index: {}]   ;;  %s6590_s5 = inlined_call_operand.hbm [shape: f32[2,32,400], index: 5, kind: output, shape index: {}]  }
   0x1   :  { %6621 = sst [smem:[#allocation17_spill]] %s6586_s1 }
   0x2   :  { %10 = vsyncpa [#allocation3], 0 }
   0x3   :  { %12 = vsyncpa [#allocation3 + $0x1], 0 }
   0x4   :  { %13 = vsyncpa [#allocation6], 0 }
   0x5   :  { %14 = vsyncpa [#allocation9], 0 }
   0x6   :  { %15 = vsyncpa [#allocation4], 0 }
   0x7   :  { %17 = vsyncpa [#allocation4 + $0x1], 0  ;;  %s5263_s18 = smov 0   ;;  %s5265_s19 = smov 0  }
   0x8   :  { %s5267_s20 = smov 0   ;;  %s5269_s21 = smov 0  }
   0x9   :  { %s5271_s22 = smov 0   ;;  %s5273_s23 = smov 0  }
   0xa LB: > { %s4264_s24 = sadd.s32 4294967295, %s5216_s23   ;;  %s4265_s25 = sadd.s32 4294967294, %s5216_s23   ;;  %s5216_s23 = sphi %s5273_s23, %s23_s23   ;;  %s5212_s22 = sphi %s5271_s22, %s6679_s22   ;;  %s5208_s21 = sphi %s5269_s21, %s6678_s21   ;;  %s5204_s20 = sphi %s5267_s20, %s6677_s20   ;;  %s5200_s19 = sphi %s5265_s19, %s6676_s19   ;;  %s5196_s18 = sphi %s5263_s18, %s6675_s18  }
   0xb   : > { %p57_p0 = scmp.ne.s32.totalorder %s5200_s19, %s5196_s18  ;;  %p5297_p1 = scmp.eq.s32.totalorder %s4264_s24, 0 }
   0xc   : > { %p5301_p2 = scmp.eq.s32.totalorder %s4264_s24, 1  ;;  %p173_p3 = scmp.eq.s32.totalorder %s4265_s25, 1 }
   0xd   : > { %s6622_s26 = scalar_select %p5297_p1, 1, 0 }
   0xe   : > { %s6623_s27 = scalar_select %p5301_p2, 1, 0 }
   0xf   : > { %p5307_p4 = por %p5297_p1, %p57_p0  ;;  %p4266_p5 = scmp.ge.s32.totalorder %s5216_s23, 1 }
  0x10   : > { %p5312_p6 = por %p173_p3, %p57_p0  ;;  %p180_p7 = scmp.lt.s32.totalorder %s5216_s23, 3 }
  0x11   : > { %s6624_s28 = scalar_select %p5307_p4, 1, 0 }
  0x12   : > { %s6625_s29 = scalar_select %p5312_p6, 1, 0 }
  0x13   : > { %p5317_p8 = pnand %p4266_p5, %p180_p7  ;;  %s5218_s6 = smov [#allocation5]  }
  0x14   : > { %6626 = sst [smem:[#allocation15_spill]] %s6625_s29  ;;  %s192_s7 = sshll.u32 %s5218_s6, 4  ;;  %s5321_s7 = int_to_ptr.vmem [resolvable:$true] %s192_s7 }
  0x15   : > { %s6627_s30 = scalar_select %p5317_p8, 1, 0 }
  0x16   : > { %p4879_p9 = pneg %p5317_p8  ;;  %s5219_s9 = smov [#allocation7]  }
  0x17   : > { %s205_s10 = sshll.u32 %s5219_s9, 4  ;;  %s6629_s1 = sld [smem:[#allocation17_spill]]  ;;  %s5332_s10 = int_to_ptr.vmem [resolvable:$true] %s205_s10 }
  0x18   : > { %p5328_p11 = pnand %p4879_p9, %p5297_p1 }
  0x1a   : > { %p5342_p13 = pneg %p5328_p11 }
  0x1d   : > { %s5012_s13 = scalar_lea.hbm %s6629_s1, 3200 }
  0x1e   : > { %p5013_p12 = scmp.ne.s32.totalorder %s6629_s1, %s5012_s13  ;;  %p5019_p5 = scmp.lt.u32.totalorder %s5012_s13, %s6629_s1 }
  0x20   : > { %p5015_p0 = pnand %p5342_p13, %p5013_p12 }
  0x22   : > { %p5016_p3 = pneg %p5015_p0 }
  0x24   : > { %p5021_p7 = pnand %p5019_p5, %p5016_p3 }
  0x26   : > { %5024 = shalt.err (!%p5021_p7)
}
  0x27   : > { %s5025_s25 = scalar_lea.vmem %s5321_s7, 3200  ;;  %p5033_p1 = scmp.lt.s32.totalorder %s5321_s7, %s5321_s7 }
  0x28   : > { %p5026_p9 = scmp.ne.s32.totalorder %s5321_s7, %s5025_s25  ;;  %p5034_p4 = scmp.lt.s32.totalorder %s5025_s25, %s5025_s25 }
  0x2a   : > { %p5028_p10 = pnand %p5026_p9, %p5342_p13  ;;  %p5035_p12 = por %p5034_p4, %p5033_p1 }
  0x2c   : > { %p5029_p6 = pneg %p5028_p10 }
  0x2e   : > { %p5036_p0 = pnand %p5035_p12, %p5029_p6 }
  0x30   : > { %5039 = shalt.err (!%p5036_p0)
}
  0x31   : > { %s5220_s6 = smov 640   ;;  %s5221_s9 = smov 40  }
  0x32   : > { %4882 = dma.hbm_to_vmem [thread:$0]  (!%p5328_p11), %s6629_s1, 3200, %s5321_s7, [#allocation6], %s5220_s6, %s5220_s6, %s5221_s9  }
  0x33   : > { %s5040_s15 = scalar_lea.hbm %s6587_s2, 2048 }
  0x34   : > { %p5041_p1 = scmp.ne.s32.totalorder %s6587_s2, %s5040_s15  ;;  %p5047_p10 = scmp.lt.u32.totalorder %s5040_s15, %s6587_s2 }
  0x36   : > { %p5043_p4 = pnand %p5041_p1, %p5342_p13 }
  0x38   : > { %p5044_p6 = pneg %p5043_p4 }
  0x3a   : > { %p5049_p3 = pnand %p5047_p10, %p5044_p6 }
  0x3c   : > { %5052 = shalt.err (!%p5049_p3)
}
  0x3d   : > { %s5053_s7 = scalar_lea.vmem %s5332_s10, 2048  ;;  %p5061_p12 = scmp.lt.s32.totalorder %s5332_s10, %s5332_s10 }
  0x3e   : > { %p5054_p5 = scmp.ne.s32.totalorder %s5332_s10, %s5053_s7  ;;  %p5062_p0 = scmp.lt.s32.totalorder %s5053_s7, %s5053_s7 }
  0x40   : > { %p5056_p7 = pnand %p5054_p5, %p5342_p13  ;;  %p5063_p1 = por %p5062_p0, %p5061_p12 }
  0x42   : > { %p5057_p9 = pneg %p5056_p7 }
  0x44   : > { %p5064_p4 = pnand %p5063_p1, %p5057_p9 }
  0x46   : > { %5067 = shalt.err (!%p5064_p4)
}
  0x47   : > { %s5222_s6 = smov 512   ;;  %s5223_s29 = smov 32  }
  0x48   : > { %4885 = dma.hbm_to_vmem [thread:$0]  (!%p5328_p11), %s6587_s2, 2048, %s5332_s10, [#allocation6], %s5222_s6, %s5222_s6, %s5223_s29  }
  0x49   : > { %s5224_s12 = smov [#allocation8]   ;;  %s5068_s17 = scalar_lea.hbm %s6589_s4, 256 }
  0x4a   : > { %s222_s13 = sshll.u32 %s5224_s12, 4  ;;  %p5069_p6 = scmp.ne.s32.totalorder %s6589_s4, %s5068_s17  ;;  %s223_s13 = int_to_ptr.vmem [resolvable:$true] %s222_s13 }
  0x4b   : > { %p5075_p5 = scmp.lt.u32.totalorder %s5068_s17, %s6589_s4 }
  0x4c   : > { %p5071_p10 = pnand %p5069_p6, %p5342_p13 }
  0x4e   : > { %p5072_p3 = pneg %p5071_p10 }
  0x50   : > { %p5077_p7 = pnand %p5075_p5, %p5072_p3 }
  0x52   : > { %5080 = shalt.err (!%p5077_p7)
}
  0x53   : > { %s5081_s10 = scalar_lea.vmem %s223_s13, 256  ;;  %p5089_p1 = scmp.lt.s32.totalorder %s223_s13, %s223_s13 }
  0x54   : > { %p5082_p9 = scmp.ne.s32.totalorder %s223_s13, %s5081_s10  ;;  %p5090_p4 = scmp.lt.s32.totalorder %s5081_s10, %s5081_s10 }
  0x56   : > { %p5084_p12 = pnand %p5082_p9, %p5342_p13  ;;  %p5091_p8 = por %p5090_p4, %p5089_p1 }
  0x58   : > { %p5085_p0 = pneg %p5084_p12 }
  0x5a   : > { %p5092_p2 = pnand %p5091_p8, %p5085_p0 }
  0x5c   : > { %5095 = shalt.err (!%p5092_p2)
}
  0x5d   : > { %4888 = dma.hbm_to_vmem [thread:$0]  (!%p5328_p11), %s6589_s4, 256, %s223_s13, [#allocation9]  }
  0x5e   : > { %s35_s1 = sadd.s32 1, %s5212_s22  ;;  %s44_s16 = sadd.s32 1, %s5204_s20 }
  0x5f   : > { %p37_p8 = scmp.ge.s32.totalorder %s35_s1, 2  ;;  %p51_p2 = scmp.ne.s32.totalorder %s5204_s20, %s5200_s19 }
  0x60   : > { %p52_p13 = scmp.eq.s32.totalorder %s5216_s23, 0  ;;  %p6632_p10 = scmp.ne.s32.totalorder %s6623_s27, 0 }
  0x61   : > { %s6681_s1 = smov (%p37_p8, %s35_s1), 0  ;;  %p4900_p11 = scmp.lt.s32.totalorder %s5216_s23, 2 }
  0x62   : > { %p5411_p6 = por %p52_p13, %p51_p2  ;;  %p5417_p3 = por %p6632_p10, %p51_p2 }
  0x63   : > { %s39_s11 = ssub.s32 %s5212_s22, %s6681_s1  ;;  %s233_s12 = sand.u32 1, %s5204_s20  }
  0x64   : > { %p42_p5 = scmp.eq.s32.totalorder %s39_s11, 0  ;;  %s4271_s13 = sshll.u32 %s233_s12, 5 }
  0x65   : > { %s4287_s15 = sshll.u32 %s5212_s22, 9  ;;  %s237_s27 = scalar_lea.vmem [#allocation2], %s4271_s13 }
  0x66   : > { %s5426_s14 = scalar_select %p42_p5, %s5204_s20, %s44_s16  }
  0x67   : > { %s5432_s25 = scalar_lea.hbm %s6585_s0, %s4287_s15  ;;  %s246_s7 = sshll.u32 %s237_s27, 4  ;;  %s5434_s7 = int_to_ptr.vmem [resolvable:$true] %s246_s7 }
  0x68   : > { %p5438_p7 = pnand %p4900_p11, %p5411_p6  ;;  %s5442_s6 = scalar_lea.sflag [#allocation3], %s233_s12 }
  0x69   : > { %s5096_s29 = scalar_lea.hbm %s5432_s25, 512  ;;  %s5101_s8 = scalar_lea.hbm %s6585_s0, 1024 }
  0x6a   : > { %p5097_p9 = scmp.ne.s32.totalorder %s5432_s25, %s5096_s29  ;;  %p5098_p12 = pneg %p5438_p7 }
  0x6b   : > { %p5102_p4 = scmp.lt.u32.totalorder %s5432_s25, %s6585_s0  ;;  %p5103_p8 = scmp.lt.u32.totalorder %s5101_s8, %s5096_s29 }
  0x6c   : > { %p5099_p0 = pnand %p5098_p12, %p5097_p9  ;;  %p5105_p13 = scmp.lt.u32.totalorder %s5096_s29, %s5432_s25 }
  0x6d   : > { %p5104_p2 = por %p5103_p8, %p5102_p4 }
  0x6e   : > { %p5100_p1 = pneg %p5099_p0 }
  0x6f   : > { %p5106_p6 = por %p5105_p13, %p5104_p2 }
  0x71   : > { %p5107_p10 = pnand %p5106_p6, %p5100_p1 }
  0x73   : > { %5110 = shalt.err (!%p5107_p10)
}
  0x74   : > { %s5111_s12 = scalar_lea.vmem %s5434_s7, 512  ;;  %s5225_s17 = smov [#allocation2]  }
  0x75   : > { %p5112_p11 = scmp.ne.s32.totalorder %s5434_s7, %s5111_s12  ;;  %s5116_s24 = sshll.u32 %s5225_s17, 4  ;;  %s5117_s24 = int_to_ptr.vmem [resolvable:$false] %s5116_s24 }
  0x76   : > { %s5118_s27 = scalar_lea.vmem %s5117_s24, 1024  ;;  %p5119_p0 = scmp.lt.s32.totalorder %s5434_s7, %s5117_s24 }
  0x77   : > { %p5114_p5 = pnand %p5112_p11, %p5098_p12  ;;  %p5120_p4 = scmp.lt.s32.totalorder %s5118_s27, %s5111_s12 }
  0x79   : > { %p5115_p9 = pneg %p5114_p5  ;;  %p5121_p8 = por %p5120_p4, %p5119_p0 }
  0x7b   : > { %p5122_p2 = pnand %p5121_p8, %p5115_p9 }
  0x7d   : > { %5125 = shalt.err (!%p5122_p2)
}
  0x7e   : > { %s5226_s29 = smov 128   ;;  %s5227_s16 = smov 8  }
  0x7f   : > { %4892 = dma.hbm_to_vmem [thread:$0]  (!%p5438_p7), %s5432_s25, 512, %s5434_s7, %s5442_s6, %s5226_s29, %s5226_s29, %s5227_s16  }
  0x80   : > { %p6635_p12 = scmp.ne.s32.totalorder %s6627_s30, 0 }
  0x82   : > { %258 = sbr.rel (%p6635_p12) target bundleno = 888 (0x378), region = 40 }
  0x89   : > { %s5473_s11 = sand.u32 1, %s5200_s19   ;;  %p6636_p1 = scmp.ne.s32.totalorder %s6624_s28, 0 }
  0x8a   : > { %s4275_s8 = sshll.u32 %s5473_s11, 5  ;;  %s261_s13 = scalar_lea.sflag [#allocation3], %s5473_s11 }
  0x8b   : > { %s5477_s15 = scalar_lea.vmem [#allocation2], %s4275_s8 }
  0x8c   : > { %5179 = dma.done.wait (%p6636_p1), %s261_s13, 512  }
  0x8d   : > { %5181 = vsyncadd (%p6636_p1), %s261_s13, 4294966784  ;;  %p6637_p7 = scmp.ne.s32.totalorder %s6622_s26, 0 }
  0x8f   : > { %5183 = dma.done.wait (%p6637_p7), [#allocation6], 5248  }
  0x90   : > { %5185 = vsyncadd (%p6637_p7), [#allocation6], 4294962048 }
  0x91   : > { %5187 = dma.done.wait (%p6637_p7), [#allocation9], 256  }
  0x92   : > { %5189 = vsyncadd (%p6637_p7), [#allocation9], 4294967040  ;;  %v6614_v0 = vmov 0.0   ;;  %v310_v1 = vld [vmem:[#allocation5 + $0x8] sm:$0xff]  ;;  %v315_v2 = vld [vmem:[#allocation5 + $0x30] sm:$0xff]  ;;  %vm347_vm0 = vcmask 1043456  }
  0x93   : > { %437 = vmatprep.mubr.f32.mxu1 %v6614_v0  ;;  %596 = vmatprep.mubr.f32.mxu0 %v6614_v0  ;;  %v309_v3 = vld [vmem:[#allocation5] sm:$0xff]  ;;  %v363_v4 = vand.u32 4294901760, %v310_v1  ;;  %v367_v5 = vand.u32 4294901760, %v315_v2  ;;  %v314_v6 = vld [vmem:[#allocation5 + $0x28] sm:$0xff]  ;;  %v320_v8 = vld [vmem:[#allocation5 + $0x58] sm:$0xff]  ;;  %vm334_vm1 = vcmask 293888  }
  0x94   : > { %v365_v7 = vand.u32 4294901760, %v309_v3  ;;  %v325_v9 = vld [vmem:[#allocation5 + $0x80] sm:$0xff]  ;;  %v369_v10 = vand.u32 4294901760, %v314_v6  ;;  %v371_v11 = vand.u32 4294901760, %v320_v8  ;;  %v319_v13 = vld [vmem:[#allocation5 + $0x50] sm:$0xff]  ;;  %v324_v14 = vld [vmem:[#allocation5 + $0x78] sm:$0xff] }
  0x95   : > { %v375_v12 = vand.u32 4294901760, %v325_v9  ;;  %v5493_v15 = vpack.c.bf16 %v367_v5, %v363_v4  ;;  %v373_v17 = vand.u32 4294901760, %v319_v13  ;;  %v377_v18 = vand.u32 4294901760, %v324_v14  ;;  %v330_v19 = vld [vmem:[#allocation5 + $0xa8] sm:$0xf]  ;;  %v305_v31 = vld [vmem:[%s5477_s15] sm:$0xff] }
  0x96   : > { %v5495_v16 = vsub.f32 %v309_v3, %v365_v7  ;;  %v5497_v20 = vpack.c.bf16 %v369_v10, %v365_v7  ;;  %v5499_v21 = vsub.f32 %v314_v6, %v369_v10  ;;  %v329_v23 = vld [vmem:[#allocation5 + $0xa0] sm:$0xf]  ;;  %v5504_v24 = vsub.f32 %v320_v8, %v371_v11  ;;  %v306_v52 = vld [vmem:[%s5477_s15 + $0x8] sm:$0xff]  ;;  %v312_v61 = vld [vmem:[#allocation5 + $0x18] sm:$0xff]  ;;  %s4279_s7 = sshll.u32 %s5473_s11, 7  ;;  %s4288_s6 = sshll.u32 %s5208_s21, 11 }
  0x97   : > { %v5501_v22 = vpack.c.bf16 %v375_v12, %v371_v11  ;;  %4440 = vmatprep.subr.bf16.mxu1 %v5493_v15  ;;  %v5506_v25 = vsub.f32 %v325_v9, %v375_v12  ;;  %v5508_v26 = vpack.c.bf16 %v377_v18, %v373_v17  ;;  %v5511_v27 = vsub.f32 %v319_v13, %v373_v17  ;;  %v317_v62 = vld [vmem:[#allocation5 + $0x40] sm:$0xff]  ;;  %s6488_s10 = scalar_lea.vmem [#allocation10], %s4279_s7  ;;  %s6531_s27 = scalar_lea.hbm %s6590_s5, %s4288_s6 }
  0x98   : > { %4442 = vmatpush1.bf16.msra.mxu1 %v5497_v20  ;;  %v352_v28 = vsel %vm347_vm0, %v330_v19, 0  ;;  %v5514_v29 = vsub.f32 %v310_v1, %v363_v4  ;;  %v5516_v30 = vsub.f32 %v315_v2, %v367_v5  ;;  %v5520_v32 = vsub.f32 %v324_v14, %v377_v18  ;;  %v311_v4 = vld [vmem:[#allocation5 + $0x10] sm:$0xff]  ;;  %v316_v18 = vld [vmem:[#allocation5 + $0x38] sm:$0xff]  ;;  %s4148_s12 = sshll.u32 %s6488_s10, 4  ;;  %s4132_s21 = scalar_lea.sflag [#allocation4], %s5473_s11  ;;  %s6533_s12 = int_to_ptr.vmem [resolvable:$true] %s4148_s12 }
  0x99   : > { %4444 = vmatprep.subr.bf16.mxu1 %v5501_v22  ;;  %v5522_v33 = vand.u32 4294901760, %v352_v28  ;;  %v349_v34 = vsel %vm347_vm0, %v329_v23, 0  ;;  %v6606_v35 = vand.u32 4294901760, %v5495_v16  ;;  %v6605_v39 = vand.u32 4294901760, %v5499_v21  ;;  %v307_v23 = vld [vmem:[%s5477_s15 + $0x10] sm:$0xff]  ;;  %s5126_s29 = scalar_lea.vmem %s6533_s12, 2048 }
  0x9a   : > { %v6610_v36 = vand.u32 4294901760, %v5514_v29  ;;  %v6608_v37 = vand.u32 4294901760, %v5516_v30  ;;  %v5528_v38 = vand.u32 4294901760, %v349_v34  ;;  %v336_v41 = vsel %vm334_vm1, %v305_v31, 0  ;;  %p5127_p13 = scmp.ne.s32.totalorder %s6533_s12, %s5126_s29  ;;  %s5230_s16 = smov [#allocation10]  }
  0x9b   : > { %v491_v40 = vsub.f32 %v5495_v16, %v6606_v35  ;;  %v6602_v42 = vand.u32 4294901760, %v5504_v24  ;;  %v6601_v43 = vand.u32 4294901760, %v5506_v25  ;;  %v503_v46 = vsub.f32 %v5499_v21, %v6605_v39  ;;  %s5130_s8 = sshll.u32 %s5230_s16, 4  ;;  %s5131_s8 = int_to_ptr.vmem [resolvable:$false] %s5130_s8 }
  0x9c   : > { %4446 = vmatpush1.bf16.msra.mxu1 %v5508_v26  ;;  %v485_v44 = vsub.f32 %v5514_v29, %v6610_v36  ;;  %v497_v45 = vsub.f32 %v5516_v30, %v6608_v37  ;;  %v5547_v47 = vand.u32 4294901760, %v336_v41  ;;  %v6599_v51 = vand.u32 4294901760, %v5511_v27  ;;  %p5128_p6 = pnand %p5127_p13, %p5417_p3  ;;  %s5132_s13 = scalar_lea.vmem %s5131_s8, 4096 }
  0x9d   : > { %380 = vmatprep.subr.mxu1 %v5522_v33  ;;  %v492_v48 = vand.u32 4294901760, %v491_v40  ;;  %v509_v49 = vsub.f32 %v5504_v24, %v6602_v42  ;;  %v521_v50 = vsub.f32 %v5506_v25, %v6601_v43  ;;  %v504_v55 = vand.u32 4294901760, %v503_v46  ;;  %p5133_p11 = scmp.lt.s32.totalorder %s6533_s12, %s5131_s8  ;;  %p5134_p5 = scmp.lt.s32.totalorder %s5132_s13, %s5126_s29 }
  0x9e   : > { %v486_v53 = vand.u32 4294901760, %v485_v44  ;;  %v498_v54 = vand.u32 4294901760, %v497_v45  ;;  %v5559_v56 = vsub.f32 %v336_v41, %v5547_v47  ;;  %v515_v59 = vsub.f32 %v5511_v27, %v6599_v51  ;;  %p5129_p10 = pneg %p5128_p6 }
  0x9f   : > { %v510_v57 = vand.u32 4294901760, %v509_v49  ;;  %v522_v58 = vand.u32 4294901760, %v521_v50  ;;  %v6598_v60 = vand.u32 4294901760, %v5520_v32  ;;  %v4449_v1 = vpack.c.bf16 %v504_v55, %v492_v48  ;;  %p5135_p9 = por %p5134_p5, %p5133_p11 }
  0xa0   : > { %v4447_v63 = vpack.c.bf16 %v498_v54, %v486_v53  ;;  %382 = vmatpush1.msra.mxu1 %v5528_v38  ;;  %v5567_v2 = vand.u32 4294901760, %v5559_v56  ;;  %v339_v3 = vsel %vm334_vm1, %v306_v52, 0  ;;  %v516_v6 = vand.u32 4294901760, %v515_v59  ;;  %v322_v53 = vld [vmem:[#allocation5 + $0x68] sm:$0xff]  ;;  %v327_v54 = vld [vmem:[#allocation5 + $0x90] sm:$0xff] }
  0xa1   : > { %v4451_v5 = vpack.c.bf16 %v522_v58, %v510_v57  ;;  %v527_v7 = vsub.f32 %v5520_v32, %v6598_v60  ;;  %v5573_v8 = vand.u32 4294901760, %v339_v3  ;;  %v5578_v10 = vsub.f32 %v352_v28, %v5522_v33  ;;  %p5136_p0 = pnand %p5135_p9, %p5129_p10 }
  0xa2   : > { %4448 = vmatprep.subr.bf16.mxu0 %v4447_v63  ;;  %v441_v9 = vsub.f32 %v5559_v56, %v5567_v2  ;;  %v1079_v11 = vand.u32 4294901760, %v312_v61  ;;  %v1083_v12 = vand.u32 4294901760, %v317_v62  ;;  %v5584_v17 = vsub.f32 %v349_v34, %v5528_v38  ;;  %v308_v63 = vld [vmem:[%s5477_s15 + $0x18] sm:$0xff] }
  0xa3   : > { %4450 = vmatpush1.bf16.msra.mxu0 %v4449_v1  ;;  %v528_v13 = vand.u32 4294901760, %v527_v7  ;;  %v5581_v14 = vsub.f32 %v339_v3, %v5573_v8  ;;  %v1081_v19 = vand.u32 4294901760, %v311_v4  ;;  %v6597_v40 = vand.u32 4294901760, %v5578_v10 }
  0xa4   : > { %v5587_v31 = vand.u32 4294901760, %v441_v9  ;;  %4452 = vmatprep.subr.bf16.mxu0 %v4451_v5  ;;  %v5590_v28 = vpack.c.bf16 %v1083_v12, %v1079_v11  ;;  %v5592_v41 = vsub.f32 %v312_v61, %v1079_v11  ;;  %v5597_v46 = vsub.f32 %v317_v62, %v1083_v12  ;;  %v321_v61 = vld [vmem:[#allocation5 + $0x60] sm:$0xff]  ;;  %v326_v62 = vld [vmem:[#allocation5 + $0x88] sm:$0xff]  ;;  %v332_v12 = vld [vmem:[#allocation5 + $0xb8] sm:$0xf] }
  0xa5   : > { %v4453_v44 = vpack.c.bf16 %v528_v13, %v516_v6  ;;  %v5595_v45 = vand.u32 4294901760, %v5581_v14  ;;  %v6596_v34 = vand.u32 4294901760, %v5584_v17  ;;  %v533_v48 = vsub.f32 %v5578_v10, %v6597_v40 }
  0xa6   : > { %443 = vmatmul.mubr.f32.vlgmr.msra.gmra.mrb[0].mxu1 %v5587_v31  ;;  %4488 = vmatprep.subr.bf16.mxu1 %v5590_v28  ;;  %v1085_v49 = vand.u32 4294901760, %v316_v18  ;;  %v5605_v50 = vsub.f32 %v311_v4, %v1081_v19  ;;  %v342_v52 = vsel %vm334_vm1, %v307_v23, 0  ;;  %v4455_v59 = vpack.c.bf16 %v5516_v30, %v5514_v29 }
  0xa7   : > { %448 = vmatprep.mubr.f32.mxu1 %v6614_v0  ;;  %4454 = vmatpush1.bf16.msra.mxu0 %v4453_v44  ;;  %v452_v55 = vsub.f32 %v5581_v14, %v5595_v45  ;;  %v539_v57 = vsub.f32 %v5584_v17, %v6596_v34  ;;  %v5614_v58 = vand.u32 4294901760, %v342_v52  ;;  %v534_v1 = vand.u32 4294901760, %v533_v48 }
  0xa8   : > { %v5619_v3 = vpack.c.bf16 %v1085_v49, %v1081_v19  ;;  %v5621_v4 = vsub.f32 %v316_v18, %v1085_v49  ;;  %v4457_v5 = vpack.c.bf16 %v5499_v21, %v5495_v16  ;;  %v1087_v11 = vand.u32 4294901760, %v322_v53 }
  0xa9   : > { %v5625_v6 = vand.u32 4294901760, %v452_v55  ;;  %v540_v7 = vand.u32 4294901760, %v539_v57  ;;  %v5628_v9 = vsub.f32 %v342_v52, %v5614_v58  ;;  %535 = vmatprep.subr.mxu0 %v534_v1  ;;  %v1091_v13 = vand.u32 4294901760, %v327_v54  ;;  %v331_v55 = vld [vmem:[#allocation5 + $0xb0] sm:$0xf] }
  0xaa   : > { %4490 = vmatpush1.bf16.msra.mxu1 %v5619_v3  ;;  %v1089_v23 = vand.u32 4294901760, %v321_v61  ;;  %v1093_v19 = vand.u32 4294901760, %v326_v62  ;;  %v345_v18 = vsel %vm334_vm1, %v308_v63, 0  ;;  %v5636_v48 = vsub.f32 %v322_v53, %v1087_v11 }
  0xab   : > { %454 = vmatmul.mubr.f32.gmra.mrb[2].mxu1 %v5625_v6  ;;  %541 = vmatpush1.msra.mxu0 %v540_v7  ;;  %v5634_v44 = vand.u32 4294901760, %v5628_v9  ;;  %v5638_v49 = vand.u32 4294901760, %v345_v18  ;;  %v4459_v52 = vpack.c.bf16 %v5506_v25, %v5504_v24  ;;  %v5644_v57 = vpack.c.bf16 %v1091_v13, %v1087_v11 }
  0xac   : > { %459 = vmatprep.mubr.f32.mxu1 %v6614_v0  ;;  %598 = vmatmul.mubr.f32.vlgmr.msra.gmra.mrb[0].mxu0 %v5547_v47  ;;  %v5646_v63 = vsub.f32 %v327_v54, %v1091_v13  ;;  %v5648_v1 = vpack.c.bf16 %v1093_v19, %v1089_v23  ;;  %v358_v7 = vsel %vm347_vm0, %v332_v12, 0  ;;  %v5654_v34 = vsub.f32 %v321_v61, %v1089_v23 }
  0xad   : > { %v463_v53 = vsub.f32 %v5628_v9, %v5634_v44  ;;  %4456 = vmatprep.subr.bf16.mxu0 %v4455_v59  ;;  %603 = vmatprep.mubr.f32.mxu0 %v6614_v0  ;;  %v5656_v40 = vsub.f32 %v326_v62, %v1093_v19  ;;  %v5658_v60 = vand.u32 4294901760, %v358_v7  ;;  %v5662_v54 = vsub.f32 %v345_v18, %v5638_v49 }
  0xae   : > { %4458 = vmatpush1.bf16.msra.mxu0 %v4457_v5  ;;  %4492 = vmatprep.subr.bf16.mxu1 %v5644_v57  ;;  %v4461_v11 = vpack.c.bf16 %v5520_v32, %v5511_v27  ;;  %v355_v12 = vsel %vm347_vm0, %v331_v55, 0  ;;  %v6600_v59 = vand.u32 4294901760, %v5592_v41  ;;  %v6603_v62 = vand.u32 4294901760, %v5597_v46 }
  0xaf   : > { %v5668_v13 = vand.u32 4294901760, %v463_v53  ;;  %4494 = vmatpush1.bf16.msra.mxu1 %v5648_v1  ;;  %4460 = vmatprep.subr.bf16.mxu0 %v4459_v52  ;;  %v5671_v61 = vand.u32 4294901760, %v355_v12  ;;  %v6604_v5 = vand.u32 4294901760, %v5605_v50  ;;  %v5676_v23 = vand.u32 4294901760, %v5662_v54 }
  0xb0   : > { %605 = vmatmul.mubr.f32.gmra.mrb[2].mxu0 %v5573_v8  ;;  %1096 = vmatprep.subr.mxu1 %v5658_v60  ;;  %v1201_v19 = vsub.f32 %v5592_v41, %v6600_v59  ;;  %v6607_v18 = vand.u32 4294901760, %v5621_v4  ;;  %v6609_v52 = vand.u32 4294901760, %v5636_v48  ;;  %v1213_v53 = vsub.f32 %v5597_v46, %v6603_v62 }
  0xb1   : > { %6638 = vst [vmem:[#allocation16_spill] sm:$0xff] %v5671_v61  ;;  %465 = vmatmul.mubr.f32.gmra.mrb[4].mxu1 %v5668_v13  ;;  %610 = vmatprep.mubr.f32.mxu0 %v6614_v0  ;;  %v5688_v55 = vsub.f32 %v355_v12, %v5671_v61  ;;  %v1207_v51 = vsub.f32 %v5605_v50, %v6604_v5  ;;  %v1236_v59 = vand.u32 4294901760, %v5646_v63  ;;  %vm2525_vm2 = vcmask 1040384  }
  0xb2   : > { %470 = vmatprep.mubr.f32.mxu1 %v6614_v0  ;;  %v474_v43 = vsub.f32 %v5662_v54, %v5676_v23  ;;  %4462 = vmatpush1.bf16.msra.mxu0 %v4461_v11  ;;  %v1202_v42 = vand.u32 4294901760, %v1201_v19  ;;  %v1219_v12 = vsub.f32 %v5621_v4, %v6607_v18  ;;  %v1225_v62 = vsub.f32 %v5636_v48, %v6609_v52 }
  0xb3   : > { %1098 = vmatpush1.msra.mxu1 %v5671_v61  ;;  %651 = vmatprep.subr.mxu0 %v5578_v10  ;;  %v1214_v5 = vand.u32 4294901760, %v1213_v53  ;;  %v1208_v39 = vand.u32 4294901760, %v1207_v51  ;;  %v1237_v35 = vsub.f32 %v5646_v63, %v1236_v59  ;;  %v1230_v11 = vand.u32 4294901760, %v5654_v34 }
  0xb4   : > { %v5712_v19 = vand.u32 4294901760, %v474_v43  ;;  %612 = vmatmul.mubr.f32.gmra.mrb[4].mxu0 %v5614_v58  ;;  %v1220_v18 = vand.u32 4294901760, %v1219_v12  ;;  %v1226_v37 = vand.u32 4294901760, %v1225_v62  ;;  %v6613_v52 = vand.u32 4294901760, %v5656_v40 }
  0xb5   : > { %617 = vmatprep.mubr.f32.mxu0 %v6614_v0  ;;  %v4495_v36 = vpack.c.bf16 %v1214_v5, %v1202_v42  ;;  %v1238_v61 = vand.u32 4294901760, %v1237_v35  ;;  %v1231_v51 = vsub.f32 %v5654_v34, %v1230_v11  ;;  %v5721_v53 = vsub.f32 %v358_v7, %v5658_v60 }
  0xb6   : > { %476 = vmatmul.mubr.f32.gmra.mrb[6].mxu1 %v5712_v19  ;;  %654 = vmatpush1.msra.mxu0 %v5584_v17  ;;  %v1243_v43 = vsub.f32 %v5656_v40, %v6613_v52  ;;  %v4497_v42 = vpack.c.bf16 %v1220_v18, %v1208_v39  ;;  %v1254_v5 = vand.u32 4294901760, %v5688_v55  ;;  %v4503_v18 = vpack.c.bf16 %v5597_v46, %v5592_v41 }
  0xb7   : > { %1153 = vmatprep.mubr.f32.mxu1 %v6614_v0  ;;  %4496 = vmatprep.subr.bf16.mxu1 %v4495_v36  ;;  %v1232_v35 = vand.u32 4294901760, %v1231_v51  ;;  %v1248_v62 = vand.u32 4294901760, %v5721_v53  ;;  %v4499_v7 = vpack.c.bf16 %v1238_v61, %v1226_v37  ;;  %v6640_v51 = vand.u32 4294901760, %v5516_v30 }
  0xb8   : > { %619 = vmatmul.mubr.f32.gmra.mrb[6].mxu0 %v5638_v49  ;;  %4464 = vmatprep.subr.bf16.mxu0 %v5493_v15  ;;  %v1244_v12 = vand.u32 4294901760, %v1243_v43  ;;  %v1255_v39 = vsub.f32 %v5688_v55, %v1254_v5  ;;  %v4507_v30 = vpack.c.bf16 %v5646_v63, %v5636_v48  ;;  %vm2512_vm11 = vcmask 203776  }
  0xb9   : > { %709 = vmatprep.mubr.f32.mxu0 %v6614_v0  ;;  %v1249_v52 = vsub.f32 %v5721_v53, %v1248_v62  ;;  %vm4117_vm12 = vcmask 130048  }
  0xba   : > { %1159 = vmatmul.mubr.f32.vlgmr.msra.gmra.mrb[8].mxu1 %v5587_v31  ;;  %v4501_v36 = vpack.c.bf16 %v1244_v12, %v1232_v35  ;;  %v1256_v61 = vand.u32 4294901760, %v1255_v39  ;;  %v6642_v35 = vand.u32 4294901760, %v5499_v21  ;;  %v6643_v12 = vand.u32 4294901760, %v5504_v24 }
  0xbb   : > { %1164 = vmatprep.mubr.f32.mxu1 %v6614_v0  ;;  %4498 = vmatpush1.bf16.msra.mxu1 %v4497_v42  ;;  %v1250_v37 = vand.u32 4294901760, %v1249_v52  ;;  %v6639_v52 = vand.u32 4294901760, %v5514_v29  ;;  %v4505_v29 = vpack.c.bf16 %v5621_v4, %v5605_v50  ;;  %v6641_v42 = vand.u32 4294901760, %v5495_v16 }
  0xbc   : > { %712 = vmatmul.mubr.f32.vlgmr.msra.gmra.mrb[0].mxu0 %v5559_v56  ;;  %4500 = vmatprep.subr.bf16.mxu1 %v4499_v7  ;;  %v6645_v16 = vand.u32 4294901760, %v5511_v27  ;;  %v6646_v21 = vand.u32 4294901760, %v5520_v32  ;;  %v6648_v27 = vand.u32 4294901760, %v5584_v17  ;;  %v313_v32 = vld [vmem:[#allocation5 + $0x20] sm:$0xff] }
  0xbd   : > { %4466 = vmatpush1.bf16.msra.mxu0 %v5497_v20  ;;  %717 = vmatprep.mubr.f32.mxu0 %v6614_v0  ;;  %v4471_v43 = vpack.c.bf16 %v6640_v51, %v6639_v52  ;;  %v4473_v7 = vpack.c.bf16 %v6642_v35, %v6641_v42  ;;  %v323_v52 = vld [vmem:[#allocation5 + $0x70] sm:$0xff]  ;;  %v328_v51 = vld [vmem:[#allocation5 + $0x98] sm:$0xff]  ;;  %v6652_v35 = vand.u32 4294901760, %v5605_v50 }
  0xbe   : > { %1170 = vmatmul.mubr.f32.gmra.mrb[10].mxu1 %v5625_v6  ;;  %4468 = vmatprep.subr.bf16.mxu0 %v5501_v22  ;;  %v4477_v24 = vpack.c.bf16 %v6646_v21, %v6645_v16 }
  0xbf   : > { %1175 = vmatprep.mubr.f32.mxu1 %v6614_v0  ;;  %4502 = vmatpush1.bf16.msra.mxu1 %v4501_v36  ;;  %v6644_v36 = vand.u32 4294901760, %v5506_v25  ;;  %v6647_v25 = vand.u32 4294901760, %v5578_v10  ;;  %v318_v10 = vld [vmem:[#allocation5 + $0x48] sm:$0xff] }
  0xc0   : > { %720 = vmatmul.mubr.f32.gmra.mrb[2].mxu0 %v5581_v14  ;;  %1251 = vmatprep.subr.mxu1 %v1250_v37  ;;  %v4509_v37 = vpack.c.bf16 %v5656_v40, %v5654_v34  ;;  %v1799_v17 = vand.u32 4294901760, %v318_v10 }
  0xc1   : > { %725 = vmatprep.mubr.f32.mxu0 %v6614_v0  ;;  %4470 = vmatpush1.bf16.msra.mxu0 %v5508_v26  ;;  %v4475_v39 = vpack.c.bf16 %v6644_v36, %v6643_v12 }
  0xc2   : > { %1181 = vmatmul.mubr.f32.gmra.mrb[12].mxu1 %v5668_v13  ;;  %759 = vmatprep.subr.mxu0 %v5522_v33 }
  0xc3   : > { %1186 = vmatprep.mubr.f32.mxu1 %v6614_v0  ;;  %1257 = vmatpush1.msra.mxu1 %v1256_v61  ;;  %v6649_v61 = vand.u32 4294901760, %v5592_v41  ;;  %v6651_v41 = vld [vmem:[#allocation16_spill] sm:$0xff] }
  0xc4   : > { %728 = vmatmul.mubr.f32.gmra.mrb[4].mxu0 %v5628_v9  ;;  %4504 = vmatprep.subr.bf16.mxu1 %v4503_v18 }
  0xc5   : > { %733 = vmatprep.mubr.f32.mxu0 %v6614_v0  ;;  %761 = vmatpush1.msra.mxu0 %v5528_v38 }
  0xc6   : > { %1192 = vmatmul.mubr.f32.gmra.mrb[14].mxu1 %v5712_v19  ;;  %4472 = vmatprep.subr.bf16.mxu0 %v4471_v43 }
  0xc7   : > { %1312 = vmatprep.mubr.f32.mxu1 %v6614_v0 }
  0xc8   : > { %736 = vmatmul.mubr.f32.gmra.mrb[6].mxu0 %v5662_v54 }
  0xc9   : > { %816 = vmatprep.mubr.f32.mxu0 %v6614_v0 }
  0xca   : > { %1314 = vmatmul.mubr.f32.vlgmr.msra.gmra.mrb[8].mxu1 %v5547_v47 }
  0xcb   : > { %1319 = vmatprep.mubr.f32.mxu1 %v6614_v0  ;;  %4506 = vmatpush1.bf16.msra.mxu1 %v4505_v29  ;;  %v5834_v29 = vsub.f32 %v318_v10, %v1799_v17 }
  0xcc   : > { %820 = vmatmul.mubr.f32.vlgmr.msra.gmra.mrb[0].mxu0 %v5567_v2  ;;  %4508 = vmatprep.subr.bf16.mxu1 %v4507_v30 }
  0xcd   : > { %4474 = vmatpush1.bf16.msra.mxu0 %v4473_v7  ;;  %825 = vmatprep.mubr.f32.mxu0 %v6614_v0  ;;  %v1915_v42 = vand.u32 4294901760, %v5834_v29  ;;  %v6653_v7 = vand.u32 4294901760, %v5621_v4 }
  0xce   : > { %1321 = vmatmul.mubr.f32.gmra.mrb[10].mxu1 %v5573_v8  ;;  %4476 = vmatprep.subr.bf16.mxu0 %v4475_v39 }
  0xcf   : > { %1326 = vmatprep.mubr.f32.mxu1 %v6614_v0  ;;  %4510 = vmatpush1.bf16.msra.mxu1 %v4509_v37  ;;  %v4521_v12 = vpack.c.bf16 %v6653_v7, %v6652_v35  ;;  %v1916_v4 = vsub.f32 %v5834_v29, %v1915_v42  ;;  %v2504_v7 = vld [vmem:[#allocation7 + $0x40] sm:$0xff] }
  0xd0   : > { %829 = vmatmul.mubr.f32.gmra.mrb[2].mxu0 %v5595_v45  ;;  %1367 = vmatprep.subr.mxu1 %v5721_v53 }
  0xd1   : > { %834 = vmatprep.mubr.f32.mxu0 %v6614_v0  ;;  %4478 = vmatpush1.bf16.msra.mxu0 %v4477_v24 }
  0xd2   : > { %1328 = vmatmul.mubr.f32.gmra.mrb[12].mxu1 %v5614_v58  ;;  %888 = vmatprep.subr.mxu0 %v6647_v25  ;;  %v1917_v25 = vand.u32 4294901760, %v1916_v4 }
  0xd3   : > { %1333 = vmatprep.mubr.f32.mxu1 %v6614_v0  ;;  %1370 = vmatpush1.msra.mxu1 %v5688_v55 }
  0xd4   : > { %838 = vmatmul.mubr.f32.gmra.mrb[4].mxu0 %v5634_v44  ;;  %4512 = vmatprep.subr.bf16.mxu1 %v5590_v28 }
  0xd5   : > { %843 = vmatprep.mubr.f32.mxu0 %v6614_v0  ;;  %892 = vmatpush1.msra.mxu0 %v6648_v27 }
  0xd6   : > { %1335 = vmatmul.mubr.f32.gmra.mrb[14].mxu1 %v5638_v49  ;;  %4480 = vmatprep.subr.bf16.mxu0 %v5493_v15  ;;  %v1796_v15 = vand.u32 4294901760, %v313_v32 }
  0xd7   : > { %1425 = vmatprep.mubr.f32.mxu1 %v6614_v0 }
  0xd8   : > { %847 = vmatmul.mubr.f32.gmra.mrb[6].mxu0 %v5676_v23  ;;  %v5832_v43 = vsub.f32 %v313_v32, %v1796_v15 }
  0xd9   : > { %947 = vmatprep.mubr.f32.mxu0 %v6614_v0 }
  0xda   : > { %1428 = vmatmul.mubr.f32.vlgmr.msra.gmra.mrb[8].mxu1 %v5559_v56  ;;  %v1908_v30 = vand.u32 4294901760, %v5832_v43 }
  0xdb   : > { %1433 = vmatprep.mubr.f32.mxu1 %v6614_v0  ;;  %4514 = vmatpush1.bf16.msra.mxu1 %v5619_v3 }
  0xdc   : > { %949 = vmatmul.mubr.f32.vlgmr.msra.gmra.mrb[0].mxu0 %v5547_v47  ;;  %4516 = vmatprep.subr.bf16.mxu1 %v5644_v57  ;;  %v1909_v50 = vsub.f32 %v5832_v43, %v1908_v30 }
  0xdd   : > { %4482 = vmatpush1.bf16.msra.mxu0 %v5497_v20  ;;  %954 = vmatprep.mubr.f32.mxu0 %v6614_v0  ;;  %v6650_v20 = vand.u32 4294901760, %v5597_v46  ;;  %v333_v46 = vld [vmem:[#allocation5 + $0xc0] sm:$0xf] }
  0xde   : > { %1436 = vmatmul.mubr.f32.gmra.mrb[10].mxu1 %v5581_v14  ;;  %4484 = vmatprep.subr.bf16.mxu0 %v5501_v22  ;;  %v5830_v22 = vpack.c.bf16 %v1799_v17, %v1796_v15  ;;  %v361_v39 = vsel %vm347_vm0, %v333_v46, 0  ;;  %v1910_v24 = vand.u32 4294901760, %v1909_v50  ;;  %v2548_v50 = vand.u32 4294901760, %v2504_v7 }
  0xdf   : > { %1441 = vmatprep.mubr.f32.mxu1 %v6614_v0  ;;  %4518 = vmatpush1.bf16.msra.mxu1 %v5648_v1  ;;  %v4519_v18 = vpack.c.bf16 %v6650_v20, %v6649_v61  ;;  %v5876_v21 = vand.u32 4294901760, %v361_v39 }
  0xe0   : > { %956 = vmatmul.mubr.f32.gmra.mrb[2].mxu0 %v5573_v8  ;;  %1475 = vmatprep.subr.mxu1 %v5658_v60  ;;  %v4543_v27 = vpack.c.bf16 %v1917_v25, %v1910_v24 }
  0xe1   : > { %961 = vmatprep.mubr.f32.mxu0 %v6614_v0  ;;  %4486 = vmatpush1.bf16.msra.mxu0 %v5508_v26  ;;  %v1802_v26 = vand.u32 4294901760, %v323_v52 }
  0xe2   : > { %1444 = vmatmul.mubr.f32.gmra.mrb[12].mxu1 %v5628_v9  ;;  %993 = vmatprep.subr.mxu0 %v5522_v33  ;;  %v1805_v33 = vand.u32 4294901760, %v328_v51 }
  0xe3   : > { %1449 = vmatprep.mubr.f32.mxu1 %v6614_v0  ;;  %1477 = vmatpush1.msra.mxu1 %v6651_v41 }
  0xe4   : > { %963 = vmatmul.mubr.f32.gmra.mrb[4].mxu0 %v5614_v58  ;;  %4520 = vmatprep.subr.bf16.mxu1 %v4519_v18  ;;  %v5857_v37 = vpack.c.bf16 %v1805_v33, %v1802_v26  ;;  %v5868_v63 = vsub.f32 %v328_v51, %v1805_v33 }
  0xe5   : > { %968 = vmatprep.mubr.f32.mxu0 %v6614_v0  ;;  %995 = vmatpush1.msra.mxu0 %v5528_v38  ;;  %v6654_v38 = vand.u32 4294901760, %v5636_v48  ;;  %v5866_v48 = vsub.f32 %v323_v52, %v1802_v26  ;;  %v2511_v26 = vld [vmem:[#allocation7 + $0x78] sm:$0x1] }
  0xe6   : > { %1452 = vmatmul.mubr.f32.gmra.mrb[14].mxu1 %v5662_v54  ;;  %4536 = vmatprep.subr.bf16.mxu0 %v5830_v22  ;;  %v6036_v25 = vsel %vm2525_vm2, %v2511_v26, 0 }
  0xe7   : > { %1532 = vmatprep.mubr.f32.mxu1 %v6614_v0  ;;  %v4523_v36 = vpack.c.bf16 %v1236_v59, %v6654_v38  ;;  %v6655_v59 = vand.u32 4294901760, %v5656_v40  ;;  %v1922_v34 = vand.u32 4294901760, %v5866_v48  ;;  %v1929_v40 = vand.u32 4294901760, %v5868_v63 }
  0xe8   : > { %970 = vmatmul.mubr.f32.gmra.mrb[6].mxu0 %v5638_v49 }
  0xe9   : > { %1050 = vmatprep.mubr.f32.mxu0 %v6614_v0  ;;  %v4525_v16 = vpack.c.bf16 %v6655_v59, %v1230_v11  ;;  %v1935_v11 = vsub.f32 %v361_v39, %v5876_v21  ;;  %v1923_v32 = vsub.f32 %v5866_v48, %v1922_v34  ;;  %v1930_v53 = vsub.f32 %v5868_v63, %v1929_v40  ;;  %v6026_v59 = vld [vmem:[#allocation7 + $0x58] sm:$0xff] }
  0xea   : > { %1536 = vmatmul.mubr.f32.vlgmr.msra.gmra.mrb[8].mxu1 %v5567_v2 }
  0xeb   : > { %1541 = vmatprep.mubr.f32.mxu1 %v6614_v0  ;;  %4522 = vmatpush1.bf16.msra.mxu1 %v4521_v12  ;;  %v1931_v10 = vand.u32 4294901760, %v1930_v53  ;;  %v5907_v15 = vand.u32 4294901760, %v1935_v11  ;;  %v2508_v12 = vld [vmem:[#allocation7 + $0x60] sm:$0x1] }
  0xec   : > { %1052 = vmatmul.mubr.f32.vlgmr.msra.gmra.mrb[0].mxu0 %v5547_v47  ;;  %4524 = vmatprep.subr.bf16.mxu1 %v4523_v36 }
  0xed   : > { %4538 = vmatpush3.bf16.msra.mxu0 %v5830_v22  ;;  %1057 = vmatprep.mubr.f32.mxu0 %v6614_v0  ;;  %v1937_v55 = vsub.f32 %v1935_v11, %v5907_v15 }
  0xee   : > { %1545 = vmatmul.mubr.f32.gmra.mrb[10].mxu1 %v5595_v45  ;;  %4540 = vmatprep.subr.bf16.mxu0 %v5857_v37 }
  0xef   : > { %1550 = vmatprep.mubr.f32.mxu1 %v6614_v0  ;;  %4526 = vmatpush1.bf16.msra.mxu1 %v4525_v16 }
  0xf0   : > { %1059 = vmatmul.mubr.f32.gmra.mrb[2].mxu0 %v5573_v8  ;;  %1604 = vmatprep.subr.mxu1 %v1248_v62  ;;  %v1924_v62 = vand.u32 4294901760, %v1923_v32 }
  0xf1   : > { %1064 = vmatprep.mubr.f32.mxu0 %v6614_v0  ;;  %4542 = vmatpush3.bf16.msra.mxu0 %v5857_v37 }
  0xf2   : > { %1554 = vmatmul.mubr.f32.gmra.mrb[12].mxu1 %v5634_v44  ;;  %4351 = vmatprep.subr.mxu0 %v5876_v21 }
  0xf3   : > { %1559 = vmatprep.mubr.f32.mxu1 %v6614_v0  ;;  %1608 = vmatpush1.msra.mxu1 %v1254_v5  ;;  %v6002_v5 = vld [vmem:[#allocation7 + $0x38] sm:$0xff] }
  0xf4   : > { %1066 = vmatmul.mubr.f32.gmra.mrb[4].mxu0 %v5614_v58  ;;  %4528 = vmatprep.subr.bf16.mxu1 %v5590_v28  ;;  %v4547_v28 = vpack.c.bf16 %v1931_v10, %v1924_v62  ;;  %v3232_v18 = vand.u32 4294901760, %v6002_v5 }
  0xf5   : > { %1071 = vmatprep.mubr.f32.mxu0 %v6614_v0  ;;  %4352 = vmatpush3.msra.mxu0 %v5876_v21 }
  0xf6   : > { %1563 = vmatmul.mubr.f32.gmra.mrb[14].mxu1 %v5676_v23  ;;  %4544 = vmatprep.subr.bf16.mxu0 %v4543_v27 }
  0xf7   : > { %1663 = vmatprep.mubr.f32.mxu1 %v6614_v0 }
  0xf8   : > { %1073 = vmatmul.mubr.f32.gmra.mrb[6].mxu0 %v5638_v49 }
  0xf9   : > { %4353 = vmatprep.mubr.f32.mxu0 %v5587_v31  ;;  %v1938_v31 = vand.u32 4294901760, %v1937_v55 }
  0xfa   : > { %1665 = vmatmul.mubr.f32.vlgmr.msra.gmra.mrb[8].mxu1 %v5547_v47 }
  0xfb   : > { %1670 = vmatprep.mubr.f32.mxu1 %v6614_v0  ;;  %4530 = vmatpush1.bf16.msra.mxu1 %v5619_v3  ;;  %v4551_v3 = vpack.c.bf16 %v5834_v29, %v5832_v43  ;;  %v2509_v29 = vld [vmem:[#allocation7 + $0x68] sm:$0x1] }
  0xfc   : > { %4354 = vmatmul.mubr.f32.vlgmr.msra.gmra.mrb[8].mxu0 %v5625_v6  ;;  %4532 = vmatprep.subr.bf16.mxu1 %v5644_v57  ;;  %v4555_v6 = vpack.c.bf16 %v5868_v63, %v5866_v48  ;;  %v2530_v35 = vsel %vm2525_vm2, %v2509_v29, 0 }
  0xfd   : > { %4546 = vmatpush3.bf16.msra.mxu0 %v4543_v27  ;;  %4356 = vmatprep.mubr.f32.mxu0 %v5668_v13  ;;  %v2550_v36 = vand.u32 4294901760, %v2530_v35  ;;  %v6040_v27 = vsub.f32 %v2504_v7, %v2548_v50 }
  0xfe   : > { %1672 = vmatmul.mubr.f32.gmra.mrb[10].mxu1 %v5573_v8  ;;  %4548 = vmatprep.subr.bf16.mxu0 %v4547_v28 }
  0xff   : > { %1677 = vmatprep.mubr.f32.mxu1 %v6614_v0  ;;  %4534 = vmatpush1.bf16.msra.mxu1 %v5648_v1  ;;  %v6000_v1 = vld [vmem:[#allocation7 + $0x18] sm:$0xff]  ;;  %v6032_v24 = vsub.f32 %v2530_v35, %v2550_v36 }
 0x100   : > { %1709 = vmatprep.subr.mxu1 %v5658_v60  ;;  %4357 = vmatmul.mubr.f32.gmra.mrb[10].mxu0 %v5712_v19  ;;  %v4571_v60 = vpack.c.bf16 %v1929_v40, %v1922_v34  ;;  %v2500_v19 = vld [vmem:[#allocation7 + $0x20] sm:$0xff]  ;;  %v3228_v17 = vand.u32 4294901760, %v6000_v1  ;;  %v2506_v34 = vld [vmem:[#allocation7 + $0x50] sm:$0xff] }
 0x101   : > { %4550 = vmatpush3.bf16.msra.mxu0 %v4547_v28  ;;  %4369 = vmatprep.mubr.f32.mxu0 %v5547_v47  ;;  %v2544_v20 = vand.u32 4294901760, %v2500_v19  ;;  %v2510_v40 = vld [vmem:[#allocation7 + $0x70] sm:$0x1]  ;;  %v3240_v28 = vand.u32 4294901760, %v6036_v25 }
 0x102   : > { %1679 = vmatmul.mubr.f32.gmra.mrb[12].mxu1 %v5614_v58  ;;  %4367 = vmatprep.subr.mxu0 %v1938_v31  ;;  %v6022_v39 = vpack.c.bf16 %v3232_v18, %v3228_v17  ;;  %v2533_v55 = vsel %vm2525_vm2, %v2510_v40, 0 }
 0x103   : > { %1684 = vmatprep.mubr.f32.mxu1 %v6614_v0  ;;  %1711 = vmatpush1.msra.mxu1 %v6651_v41  ;;  %v2502_v41 = vld [vmem:[#allocation7 + $0x30] sm:$0xff] }
 0x104   : > { %v3234_v63 = vand.u32 4294901760, %v2502_v41 }
 0x105   : > { %4368 = vmatpush3.msra.mxu0 %v1938_v31  ;;  %v3238_v31 = vand.u32 4294901760, %v2506_v34 }
 0x106   : > { %1686 = vmatmul.mubr.f32.gmra.mrb[14].mxu1 %v5638_v49  ;;  %4552 = vmatprep.subr.bf16.mxu0 %v4551_v3  ;;  %v6049_v10 = vsub.f32 %v2502_v41, %v3234_v63 }
 0x107   : > { %1766 = vmatprep.mubr.f32.mxu1 %v6614_v0  ;;  %4370 = vmatmul.mubr.f32.vlgmr.msra.gmra.mrb[8].mxu0 %v5573_v8 }
 0x108   : > { %4554 = vmatpush3.bf16.msra.mxu0 %v4551_v3  ;;  %4372 = vmatprep.mubr.f32.mxu0 %v5614_v58 }
 0x109   : > { %4556 = vmatprep.subr.bf16.mxu0 %v4555_v6 }
 0x10a   : > { %1768 = vmatmul.mubr.f32.vlgmr.msra.gmra.mrb[8].mxu1 %v5547_v47 }
 0x10b   : > { %1773 = vmatprep.mubr.f32.mxu1 %v6614_v0  ;;  %4373 = vmatmul.mubr.f32.gmra.mrb[10].mxu0 %v5638_v49 }
 0x10c   : > { %4558 = vmatpush3.bf16.msra.mxu0 %v4555_v6  ;;  %4385 = vmatprep.mubr.f32.mxu0 %v5559_v56  ;;  %v4567_v56 = vpack.c.bf16 %v1915_v42, %v1908_v30  ;;  %v6016_v30 = vsub.f32 %v2500_v19, %v2544_v20  ;;  %v2505_v42 = vld [vmem:[#allocation7 + $0x48] sm:$0xff]  ;;  %v6071_v19 = vsub.f32 %v6000_v1, %v3228_v17 }
 0x10d   : > { %4383 = vmatprep.subr.mxu0 %v1935_v11  ;;  %v2546_v38 = vand.u32 4294901760, %v2505_v42  ;;  %v6088_v1 = vsub.f32 %v6002_v5, %v3232_v18  ;;  %v6618_v18 = vand.u32 4294901760, %v6040_v27 }
 0x10e   : > { %1775 = vmatmul.mubr.f32.gmra.mrb[10].mxu1 %v5573_v8 }
 0x10f   : > { %1780 = vmatprep.mubr.f32.mxu1 %v6614_v0  ;;  %v6028_v16 = vpack.c.bf16 %v2550_v36, %v2546_v38  ;;  %v6620_v5 = vand.u32 4294901760, %v6088_v1 }
 0x110   : > { %4384 = vmatpush3.msra.mxu0 %v1935_v11 }
 0x111   : > { %4560 = vmatprep.subr.bf16.mxu0 %v5830_v22  ;;  %4386 = vmatmul.mubr.f32.vlgmr.msra.gmra.mrb[8].mxu0 %v5581_v14 }
 0x112   : > { %1782 = vmatmul.mubr.f32.gmra.mrb[12].mxu1 %v5614_v58  ;;  %4562 = vmatpush3.bf16.msra.mxu0 %v5830_v22 }
 0x113   : > { %1787 = vmatprep.mubr.f32.mxu1 %v6614_v0  ;;  %4564 = vmatprep.subr.bf16.mxu0 %v5857_v37 }
 0x114   : > { %4388 = vmatprep.mubr.f32.mxu0 %v5628_v9 }
 0x115   : > { %4389 = vmatmul.mubr.f32.gmra.mrb[10].mxu0 %v5662_v54 }
 0x116   : > { %1789 = vmatmul.mubr.f32.gmra.mrb[14].mxu1 %v5638_v49  ;;  %4566 = vmatpush3.bf16.msra.mxu0 %v5857_v37 }
 0x117   : > { %4399 = vmatprep.subr.mxu0 %v5876_v21  ;;  %4401 = vmatprep.mubr.f32.mxu0 %v5567_v2 }
 0x118   : > { %2610 = vmatprep.mubr.f32.mxu1 %v6614_v0 }
 0x11a   : > { %4400 = vmatpush3.msra.mxu0 %v5876_v21 }
 0x11b   : > { %4568 = vmatprep.subr.bf16.mxu0 %v4567_v56  ;;  %4402 = vmatmul.mubr.f32.vlgmr.msra.gmra.mrb[8].mxu0 %v5595_v45 }
 0x11c   : > { %4570 = vmatpush3.bf16.msra.mxu0 %v4567_v56  ;;  %4404 = vmatprep.mubr.f32.mxu0 %v5634_v44 }
 0x11d   : > { %4572 = vmatprep.subr.bf16.mxu0 %v4571_v60 }
 0x11f   : > { %4405 = vmatmul.mubr.f32.gmra.mrb[10].mxu0 %v5676_v23  ;;  %v2496_v23 = vld [vmem:[#allocation7] sm:$0xff] }
 0x120   : > { %4574 = vmatpush3.bf16.msra.mxu0 %v4571_v60  ;;  %4417 = vmatprep.mubr.f32.mxu0 %v5547_v47  ;;  %v2540_v61 = vand.u32 4294901760, %v2496_v23  ;;  %v3242_v60 = vand.u32 4294901760, %v2533_v55 }
 0x121   : > { %4415 = vmatprep.subr.mxu0 %v5907_v15 }
 0x122   : > { %v6012_v33 = vpack.c.bf16 %v2544_v20, %v2540_v61  ;;  %v6014_v46 = vsub.f32 %v2496_v23, %v2540_v61  ;;  %v6074_v61 = vpack.c.bf16 %v3242_v60, %v3238_v31  ;;  %v6076_v20 = vsub.f32 %v2533_v55, %v3242_v60 }
 0x123   : > { %v2688_v60 = vsub.f32 %v6040_v27, %v6618_v18 }
 0x124   : > { %4416 = vmatpush3.msra.mxu0 %v5907_v15  ;;  %v3236_v15 = vand.u32 4294901760, %v6026_v59 }
 0x125   : > { %4576 = vmatprep.subr.bf16.mxu0 %v5830_v22  ;;  %4418 = vmatmul.mubr.f32.vlgmr.msra.gmra.mrb[8].mxu0 %v5573_v8 }
 0x126   : > { %4578 = vmatpush3.bf16.msra.mxu0 %v5830_v22  ;;  %4420 = vmatprep.mubr.f32.mxu0 %v5614_v58  ;;  %v2498_v22 = vld [vmem:[#allocation7 + $0x10] sm:$0xff]  ;;  %v6058_v56 = vpack.c.bf16 %v3240_v28, %v3236_v15 }
 0x127   : > { %4580 = vmatprep.subr.bf16.mxu0 %v5857_v37  ;;  %v3230_v48 = vand.u32 4294901760, %v2498_v22 }
 0x129   : > { %4421 = vmatmul.mubr.f32.gmra.mrb[10].mxu0 %v5638_v49  ;;  %v6044_v53 = vpack.c.bf16 %v3234_v63, %v3230_v48  ;;  %v6047_v62 = vsub.f32 %v2498_v22, %v3230_v48 }
 0x12a   : > { %4582 = vmatpush3.bf16.msra.mxu0 %v5857_v37  ;;  %4433 = vmatprep.mubr.f32.mxu0 %v5547_v47  ;;  %v2527_v37 = vsel %vm2525_vm2, %v2508_v12, 0  ;;  %v6619_v12 = vand.u32 4294901760, %v6049_v10 }
 0x12b   : > { %4431 = vmatprep.subr.mxu0 %v5876_v21  ;;  %v2552_v4 = vand.u32 4294901760, %v2527_v37  ;;  %v6616_v7 = vand.u32 4294901760, %v6047_v62 }
 0x12d   : > { %v6038_v11 = vpack.c.bf16 %v2552_v4, %v2548_v50  ;;  %v6042_v32 = vsub.f32 %v2527_v37, %v2552_v4  ;;  %v2693_v37 = vand.u32 4294901760, %v6032_v24  ;;  %v3354_v55 = vsub.f32 %v6047_v62, %v6616_v7 }
 0x12e   : > { %4432 = vmatpush3.msra.mxu0 %v5876_v21  ;;  %v6030_v21 = vsub.f32 %v2505_v42, %v2546_v38  ;;  %v3347_v42 = vand.u32 4294901760, %v6071_v19 }
 0x12f   : > { %4434 = vmatmul.mubr.f32.vlgmr.msra.gmra.mrb[8].mxu0 %v5573_v8  ;;  %4632 = vmatprep.subr.bf16.mxu0 %v6022_v39  ;;  %v6617_v48 = vand.u32 4294901760, %v6042_v32 }
 0x130   : > { %4436 = vmatprep.mubr.f32.mxu0 %v5614_v58  ;;  %v2497_v58 = vld [vmem:[#allocation7 + $0x8] sm:$0xff]  ;;  %4634 = vmatpush1.bf16.msra.mxu0 %v6044_v53  ;;  %v2681_v36 = vand.u32 4294901760, %v6030_v21  ;;  %v3348_v50 = vsub.f32 %v6071_v19, %v3347_v42 }
 0x131   : > { %v2538_v54 = vand.u32 4294901760, %v2497_v58  ;;  %4636 = vmatprep.subr.bf16.mxu0 %v6058_v56 }
 0x132   : > { %v2682_v63 = vsub.f32 %v6030_v21, %v2681_v36  ;;  %v3349_v40 = vand.u32 4294901760, %v3348_v50 }
 0x133   : > { %4437 = vmatmul.mubr.f32.gmra.mrb[10].mxu0 %v5638_v49  ;;  %v2501_v49 = vld [vmem:[#allocation7 + $0x28] sm:$0xff]  ;;  %v6008_v51 = vsub.f32 %v2497_v58, %v2538_v54  ;;  %v2663_v58 = vand.u32 4294901760, %v6014_v46 }
 0x134   : > { %3300 = vmatprep.mubr.f32.mxu0 %v6614_v0  ;;  %v2542_v13 = vand.u32 4294901760, %v2501_v49  ;;  %4638 = vmatpush1.bf16.msra.mxu0 %v6074_v61 }
 0x135   : > { %v2657_v3 = vand.u32 4294901760, %v6008_v51  ;;  %v2664_v22 = vsub.f32 %v6014_v46, %v2663_v58 }
 0x136   : > { %v6006_v52 = vpack.c.bf16 %v2542_v13, %v2538_v54  ;;  %v6010_v43 = vsub.f32 %v2501_v49, %v2542_v13  ;;  %v2675_v49 = vand.u32 4294901760, %v6016_v30  ;;  %v6062_v54 = vsub.f32 %v2506_v34, %v3238_v31 }
 0x137   : > { %v2658_v13 = vsub.f32 %v6008_v51, %v2657_v3  ;;  %v2665_v17 = vand.u32 4294901760, %v2664_v22  ;;  %v2694_v34 = vsub.f32 %v6032_v24, %v2693_v37  ;;  %v3360_v31 = vsub.f32 %v6088_v1, %v6620_v5 }
 0x138   : > { %4584 = vmatprep.subr.bf16.mxu1 %v6006_v52  ;;  %v2669_v6 = vand.u32 4294901760, %v6010_v43  ;;  %v2676_v29 = vsub.f32 %v6016_v30, %v2675_v49  ;;  %v2683_v22 = vand.u32 4294901760, %v2682_v63  ;;  %v3377_v18 = vand.u32 4294901760, %v6062_v54 }
 0x139   : > { %4586 = vmatpush1.bf16.msra.mxu1 %v6012_v33  ;;  %v2659_v41 = vand.u32 4294901760, %v2658_v13  ;;  %v2700_v13 = vsub.f32 %v6042_v32, %v6617_v48  ;;  %v6131_v48 = vsub.f32 %v6036_v25, %v3240_v28 }
 0x13a   : > { %4588 = vmatprep.subr.bf16.mxu1 %v6028_v16  ;;  %v2670_v23 = vsub.f32 %v6010_v43, %v2669_v6  ;;  %v2677_v35 = vand.u32 4294901760, %v2676_v29  ;;  %v2695_v29 = vand.u32 4294901760, %v2694_v34 }
 0x13c   : > { %v2671_v26 = vand.u32 4294901760, %v2670_v23  ;;  %v6098_v4 = vpack.c.bf16 %v2677_v35, %v2665_v17  ;;  %v3366_v23 = vsub.f32 %v6049_v10, %v6619_v12  ;;  %v3361_v17 = vand.u32 4294901760, %v3360_v31 }
 0x13d   : > { %4590 = vmatpush1.bf16.msra.mxu1 %v6038_v11  ;;  %v2689_v35 = vand.u32 4294901760, %v2688_v60  ;;  %v6127_v0 = vpack.c.bf16 %v2695_v29, %v2683_v22  ;;  %v3378_v31 = vsub.f32 %v6062_v54, %v3377_v18 }
 0x13e   : > { %v4591_v38 = vpack.c.bf16 %v2671_v26, %v2659_v41  ;;  %v3355_v41 = vand.u32 4294901760, %v3354_v55  ;;  %v6125_v26 = vsub.f32 %v6026_v59, %v3236_v15  ;;  %v3367_v50 = vand.u32 4294901760, %v3366_v23 }
 0x13f   : > { %v4639_v12 = vpack.c.bf16 %v3361_v17, %v3349_v40  ;;  %v3389_v59 = vand.u32 4294901760, %v6076_v20  ;;  %v3383_v55 = vand.u32 4294901760, %v6131_v48  ;;  %v3379_v23 = vand.u32 4294901760, %v3378_v31 }
 0x140   : > { %4592 = vmatprep.subr.bf16.mxu1 %v4591_v38  ;;  %v2701_v38 = vand.u32 4294901760, %v2700_v13  ;;  %v3371_v7 = vand.u32 4294901760, %v6125_v26  ;;  %v6136_v34 = vpack.c.bf16 %v3367_v50, %v3355_v41  ;;  %v6176_v31 = vpack.c.bf16 %v2675_v49, %v2663_v58 }
 0x141   : > { %4640 = vmatprep.subr.bf16.mxu0 %v4639_v12  ;;  %v3390_v25 = vsub.f32 %v6076_v20, %v3389_v59  ;;  %v3384_v13 = vsub.f32 %v6131_v48, %v3383_v55  ;;  %v6658_v49 = vand.u32 4294901760, %v6042_v32 }
 0x142   : > { %v6134_v63 = vpack.c.bf16 %v2701_v38, %v2689_v35  ;;  %v3372_v15 = vsub.f32 %v6125_v26, %v3371_v7  ;;  %v6170_v38 = vpack.c.bf16 %v2669_v6, %v2657_v3 }
 0x143   : > { %v3391_v22 = vand.u32 4294901760, %v3390_v25  ;;  %v3385_v29 = vand.u32 4294901760, %v3384_v13 }
 0x144   : > { %v3373_v40 = vand.u32 4294901760, %v3372_v15 }
 0x145   : > { %v6148_v41 = vpack.c.bf16 %v3391_v22, %v3379_v23 }
 0x146   : > { %v6150_v17 = vpack.c.bf16 %v3385_v29, %v3373_v40 }
 0x179   : > { %v5984_v2 = vpop.f32.mrb[0].mxu1 }
 0x17a   : > { %v5986_v14 = vpop.f32.mrb[1].mxu1 }
 0x17e   : > { %v5988_v45 = vpop.f32.mrb[2].mxu1 }
 0x17f   : > { %v5990_v9 = vpop.f32.mrb[3].mxu1 }
 0x184   : > { %v5992_v47 = vpop.f32.mrb[4].mxu1 }
 0x185   : > { %v5994_v44 = vpop.f32.mrb[5].mxu1 }
 0x189   : > { %v5996_v57 = vpop.f32.mrb[6].mxu1 }
 0x18a   : > { %v5998_v8 = vpop.f32.mrb[7].mxu1 }
 0x1bf   : > { %v1053_v25 = vpop.f32.mrb[0].mxu0 }
 0x1c0   : > { %v4683_v40 = vadd.f32 %v1053_v25, %v5984_v2  ;;  %v1055_v13 = vpop.f32.mrb[1].mxu0 }
 0x1c1   : > { %v4684_v23 = vadd.f32 %v1055_v13, %v5986_v14 }
 0x1c2   : > { %v2422_v22 = vmul.f32 %v4683_v40, %v4683_v40 }
 0x1c3   : > { %v2426_v29 = vmul.f32 %v4684_v23, %v4684_v23  ;;  %v1060_v35 = vpop.f32.mrb[2].mxu0 }
 0x1c4   : > { %v4685_v2 = vadd.f32 %v1060_v35, %v5988_v45  ;;  %v1062_v25 = vpop.f32.mrb[3].mxu0  ;;  %v6186_v45 = vpack.c.bf16 %v2693_v37, %v2681_v36  ;;  %v6660_v36 = vand.u32 4294901760, %v6049_v10 }
 0x1c5   : > { %v2430_v15 = vadd.f32 %v2426_v29, %v2422_v22  ;;  %v4686_v14 = vadd.f32 %v1062_v25, %v5990_v9  ;;  %v6656_v9 = vand.u32 4294901760, %v6088_v1  ;;  %v6208_v25 = vpack.c.bf16 %v3383_v55, %v3371_v7 }
 0x1c6   : > { %v2423_v40 = vmul.f32 %v4685_v2, %v4685_v2 }
 0x1c7   : > { %v2427_v13 = vmul.f32 %v4686_v14, %v4686_v14  ;;  %v1067_v23 = vpop.f32.mrb[4].mxu0  ;;  %v6192_v58 = vpack.c.bf16 %v6656_v9, %v3347_v42  ;;  %v6210_v14 = vpack.c.bf16 %v3389_v59, %v3377_v18 }
 0x1c8   : > { %v4687_v50 = vadd.f32 %v1067_v23, %v5992_v47  ;;  %v1069_v28 = vpop.f32.mrb[5].mxu0  ;;  %v6657_v47 = vand.u32 4294901760, %v6040_v27 }
 0x1c9   : > { %v2431_v3 = vadd.f32 %v2427_v13, %v2423_v40  ;;  %v4688_v6 = vadd.f32 %v1069_v28, %v5994_v44  ;;  %6661 = vst [vmem:[#allocation16_spill] sm:$0xff] %v6210_v14 }
 0x1ca   : > { %v2424_v12 = vmul.f32 %v4687_v50, %v4687_v50  ;;  %v6198_v44 = vpack.c.bf16 %v6658_v49, %v6657_v47  ;;  %v6659_v50 = vand.u32 4294901760, %v6047_v62 }
 0x1cb   : > { %v2428_v60 = vmul.f32 %v4688_v6, %v4688_v6  ;;  %v1074_v5 = vpop.f32.mrb[6].mxu0 }
 0x1cc   : > { %v4689_v28 = vadd.f32 %v1074_v5, %v5996_v57  ;;  %v1076_v35 = vpop.f32.mrb[7].mxu0  ;;  %v6205_v37 = vpack.c.bf16 %v6660_v36, %v6659_v50 }
 0x1cd   : > { %v2432_v22 = vadd.f32 %v2428_v60, %v2424_v12  ;;  %v4690_v29 = vadd.f32 %v1076_v35, %v5998_v8 }
 0x1ce   : > { %v2425_v42 = vmul.f32 %v4689_v28, %v4689_v28 }
 0x1cf   : > { %v2429_v2 = vmul.f32 %v4690_v29, %v4690_v29 }
 0x1d1   : > { %v2433_v40 = vadd.f32 %v2429_v2, %v2425_v42 }
 0x1dd   : > { %v1769_v13 = vpop.f32.mrb[8].mxu1 }
 0x1de   : > { %v2434_v23 = vmul.f32 %v1769_v13, %v1769_v13  ;;  %v6212_v57 = vpop.f32.mrb[9].mxu1 }
 0x1e0   : > { %v2438_v5 = vadd.f32 %v2434_v23, %v2430_v15 }
 0x1e1   : > { %v1776_v6 = vpop.f32.mrb[10].mxu1 }
 0x1e2   : > { %v2435_v9 = vmul.f32 %v1776_v6, %v1776_v6  ;;  %v1778_v47 = vpop.f32.mrb[11].mxu1  ;;  %vm2444_vm4 = vcmp.eq.f32.partialorder %v2438_v5, inf  ;;  %v2447_v6 = vand.u32 2147483648, %v2438_v5  ;;  %vm2446_vm6 = vcmp.eq.f32.partialorder %v2438_v5, 0.0 }
 0x1e4   : > { %v2439_v49 = vadd.f32 %v2435_v9, %v2431_v3  ;;  %v5229_v9 = vmov 35  }
 0x1e5   : > { %v1783_v50 = vpop.f32.mrb[12].mxu1  ;;  %4966 = vset.pattern.permute.xlu0 %v5229_v9  ;;  %4967 = vset.pattern.permute.xlu1 %v5229_v9 }
 0x1e6   : > { %v2436_v60 = vmul.f32 %v1783_v50, %v1783_v50  ;;  %v6214_v12 = vpop.f32.mrb[13].mxu1  ;;  %4968 = vrsqrt.f32 %v2439_v49  ;;  %vm2451_vm3 = vcmp.eq.f32.partialorder %v2439_v49, inf  ;;  %v2454_v13 = vand.u32 2147483648, %v2439_v49  ;;  %v4280_v50 = vld [vmem:[%s6588_s3] ss:$0 sm:$0xff] }
 0x1e7   : > { %4970 = vrsqrt.f32 %v2438_v5  ;;  %vm2453_vm5 = vcmp.eq.f32.partialorder %v2439_v49, 0.0 }
 0x1e8   : > { %v2440_v8 = vadd.f32 %v2436_v60, %v2432_v22 }
 0x1e9   : > { %v1790_v7 = vpop.f32.mrb[14].mxu1 }
 0x1ea   : > { %v2437_v18 = vmul.f32 %v1790_v7, %v1790_v7  ;;  %v1792_v59 = vpop.f32.mrb[15].mxu1  ;;  %4972 = vrsqrt.f32 %v2440_v8  ;;  %vm2458_vm8 = vcmp.eq.f32.partialorder %v2440_v8, inf  ;;  %vm2460_vm10 = vcmp.eq.f32.partialorder %v2440_v8, 0.0 }
 0x1ec   : > { %v2441_v55 = vadd.f32 %v2437_v18, %v2433_v40  ;;  %v5008_v18 = vld [vmem:[%s5477_s15] sm:$0xff] }
 0x1ed   : > { %4083 = vperm.xlu0 %4966, %v5008_v18  }
 0x1ee   : > { %4974 = vrsqrt.f32 %v2441_v55  ;;  %vm2465_vm7 = vcmp.eq.f32.partialorder %v2441_v55, inf  ;;  %vm2467_vm9 = vcmp.eq.f32.partialorder %v2441_v55, 0.0 }
 0x1f0   : > { %v4969_v28 = vpop.eup %4968 }
 0x1f1   : > { %v4971_v35 = vpop.eup %4970  ;;  %v2450_v15 = vmul.f32 %v4969_v28, %v2439_v49  ;;  %v5009_v28 = vld [vmem:[%s5477_s15 + $0x10] sm:$0xff] }
 0x1f2   : > { %v2443_v36 = vmul.f32 %v4971_v35, %v2438_v5  ;;  %4091 = vperm.xlu1 %4967, %v5009_v28  }
 0x1f3   : > { %v2452_v3 = vsel %vm2451_vm3, %v2439_v49, %v2450_v15  ;;  %v2468_v49 = vand.u32 2147483648, %v2441_v55  ;;  %v2461_v15 = vand.u32 2147483648, %v2440_v8 }
 0x1f4   : > { %v4973_v29 = vpop.eup %4972  ;;  %v2445_v22 = vsel %vm2444_vm4, %v2438_v5, %v2443_v36  ;;  %v2455_v40 = vsel %vm2453_vm5, %v2454_v13, %v2452_v3  ;;  %v5011_v13 = vld [vmem:[%s5477_s15 + $0x18] sm:$0xff] }
 0x1f5   : > { %v2457_v23 = vmul.f32 %v4973_v29, %v2440_v8  ;;  %v2448_v60 = vsel %vm2446_vm6, %v2447_v6, %v2445_v22  ;;  %v2477_v5 = vmul.f32 %v4280_v50, %v2455_v40 }
 0x1f6   : > { %v2476_v36 = vmul.f32 %v4280_v50, %v2448_v60  ;;  %4095 = vperm.xlu1 %4967, %v5011_v13  }
 0x1f7   : > { %v2459_v35 = vsel %vm2458_vm8, %v2440_v8, %v2457_v23 }
 0x1f8   : > { %v4975_v42 = vpop.eup %4974  ;;  %v2462_v3 = vsel %vm2460_vm10, %v2461_v15, %v2459_v35 }
 0x1f9   : > { %v2464_v2 = vmul.f32 %v4975_v42, %v2441_v55  ;;  %v4281_v42 = vld [vmem:[%s6588_s3 + $0x1] ss:$0 sm:$0xff]  ;;  %v2478_v60 = vmul.f32 %v4280_v50, %v2462_v3 }
 0x1fa   : > { %v2485_v6 = vadd.f32 %v4281_v42, %v2477_v5 }
 0x1fb   : > { %v2466_v7 = vsel %vm2465_vm7, %v2441_v55, %v2464_v2  ;;  %v5010_v2 = vld [vmem:[%s5477_s15 + $0x8] sm:$0xff]  ;;  %v2484_v55 = vadd.f32 %v4281_v42, %v2476_v36 }
 0x1fc   : > { %v2469_v29 = vsel %vm2467_vm9, %v2468_v49, %v2466_v7  ;;  %4087 = vperm.xlu0 %4966, %v5010_v2  }
 0x1fd   : > { %v2479_v23 = vmul.f32 %v4280_v50, %v2469_v29 }
 0x1ff   : > { %v2487_v35 = vadd.f32 %v4281_v42, %v2479_v23 }
 0x202   : > { %v4435_v22 = vpop.f32.mrb[8].mxu0 }
 0x203   : > { %v2489_v9 = vmul.f32 %v4435_v22, %v1778_v47  ;;  %v2400_v18 = vpop.f32.mrb[9].mxu0  ;;  %v2486_v47 = vadd.f32 %v4281_v42, %v2478_v60 }
 0x204   : > { %v2488_v40 = vmul.f32 %v2400_v18, %v6212_v57 }
 0x205   : > { %v2493_v8 = vmul.f32 %v2489_v9, %v2485_v6 }
 0x206   : > { %v2492_v7 = vmul.f32 %v2488_v40, %v2484_v55  ;;  %v4438_v28 = vpop.f32.mrb[10].mxu0 }
 0x207   : > { %v2517_v49 = vsel %vm2512_vm11, %v2493_v8, 0  ;;  %v2491_v15 = vmul.f32 %v4438_v28, %v1792_v59  ;;  %v2412_v2 = vpop.f32.mrb[11].mxu0 }
 0x208   : > { %v6228_v14 = vand.u32 4294901760, %v2517_v49  ;;  %v2514_v5 = vsel %vm2512_vm11, %v2492_v7, 0  ;;  %v2490_v29 = vmul.f32 %v2412_v2, %v6214_v12  ;;  %v6662_v7 = vmov 0.0  }
 0x209   : > { %v6232_v13 = vand.u32 4294901760, %v2514_v5  ;;  %v2495_v36 = vmul.f32 %v2491_v15, %v2487_v35 }
 0x20a   : > { %v6235_v57 = vsub.f32 %v2517_v49, %v6228_v14  ;;  %v2494_v50 = vmul.f32 %v2490_v29, %v2486_v47 }
 0x20b   : > { %v6238_v3 = vsub.f32 %v2514_v5, %v6232_v13  ;;  %v2523_v59 = vsel %vm2512_vm11, %v2495_v36, 0 }
 0x20c   : > { %v2520_v22 = vsel %vm2512_vm11, %v2494_v50, 0  ;;  %v6245_v42 = vand.u32 4294901760, %v2523_v59  ;;  %v6250_v9 = vand.u32 4294901760, %v6235_v57 }
 0x20d   : > { %v6243_v6 = vand.u32 4294901760, %v6238_v3  ;;  %v6247_v12 = vand.u32 4294901760, %v2520_v22 }
 0x20e   : > { %v6258_v55 = vsub.f32 %v2523_v59, %v6245_v42  ;;  %v2625_v60 = vsub.f32 %v6235_v57, %v6250_v9 }
 0x20f   : > { %v6253_v18 = vsub.f32 %v2520_v22, %v6247_v12  ;;  %v2614_v23 = vsub.f32 %v6238_v3, %v6243_v6 }
 0x210   : > { %v2626_v28 = vand.u32 4294901760, %v2625_v60  ;;  %v6272_v35 = vand.u32 4294901760, %v6258_v55 }
 0x211   : > { %v2615_v40 = vand.u32 4294901760, %v2614_v23  ;;  %v6263_v8 = vand.u32 4294901760, %v6253_v18 }
 0x212   : > { %v2647_v15 = vsub.f32 %v6258_v55, %v6272_v35 }
 0x213   : > { %2616 = vmatmul.mubr.f32.vlgmr.msra.gmra.mrb[16].mxu1 %v2615_v40  ;;  %3306 = vmatmul.mubr.f32.vlgmr.msra.gmra.mrb[12].mxu0 %v2615_v40  ;;  %v2636_v49 = vsub.f32 %v6253_v18, %v6263_v8 }
 0x214   : > { %4594 = vmatpush1.bf16.msra.mxu1 %v6098_v4  ;;  %2621 = vmatprep.mubr.f32.mxu1 %v6662_v7 }
 0x215   : > { %3311 = vmatprep.mubr.f32.mxu0 %v6662_v7  ;;  %4596 = vmatprep.subr.bf16.mxu1 %v6127_v0  ;;  %v2637_v4 = vand.u32 4294901760, %v2636_v49  ;;  %v6663_v0 = vpack.c.bf16 %v6010_v43, %v6008_v51  ;;  %v6665_v51 = vpack.c.bf16 %v6016_v30, %v6014_v46  ;;  %v6666_v43 = vpack.c.bf16 %v6032_v24, %v6030_v21  ;;  %v6671_v24 = vld [vmem:[#allocation16_spill] sm:$0xff] }
 0x216   : > { %4642 = vmatpush1.bf16.msra.mxu0 %v6136_v34  ;;  %v2648_v34 = vand.u32 4294901760, %v2647_v15  ;;  %v6668_v46 = vpack.c.bf16 %v6042_v32, %v6040_v27  ;;  %v6669_v30 = vpack.c.bf16 %v6131_v48, %v6125_v26  ;;  %v6670_v21 = vpack.c.bf16 %v6076_v20, %v6062_v54 }
 0x217   : > { %2627 = vmatmul.mubr.f32.gmra.mrb[18].mxu1 %v2626_v28  ;;  %3317 = vmatmul.mubr.f32.gmra.mrb[14].mxu0 %v2626_v28 }
 0x218   : > { %2632 = vmatprep.mubr.f32.mxu1 %v6662_v7  ;;  %3322 = vmatprep.mubr.f32.mxu0 %v6662_v7 }
 0x219   : > { %4598 = vmatpush1.bf16.msra.mxu1 %v6134_v63  ;;  %4644 = vmatprep.subr.bf16.mxu0 %v6150_v17  ;;  %v6664_v63 = vpack.c.bf16 %v6088_v1, %v6071_v19  ;;  %v6667_v19 = vpack.c.bf16 %v6049_v10, %v6047_v62  ;;  %v3918_v62 = vld [vmem:[#allocation8] ss:$4 sm:$0xf] }
 0x21a   : > { %4646 = vmatpush1.bf16.msra.mxu0 %v6148_v41  ;;  %4600 = vmatprep.subr.bf16.mxu1 %v6663_v0 }
 0x21b   : > { %2638 = vmatmul.mubr.f32.gmra.mrb[20].mxu1 %v2637_v4  ;;  %3328 = vmatmul.mubr.f32.gmra.mrb[16].mxu0 %v2637_v4 }
 0x21c   : > { %2643 = vmatprep.mubr.f32.mxu1 %v6662_v7  ;;  %3333 = vmatprep.mubr.f32.mxu0 %v6662_v7 }
 0x21d   : > { %4648 = vmatprep.subr.bf16.mxu0 %v6664_v63 }
 0x21f   : > { %2649 = vmatmul.mubr.f32.gmra.mrb[22].mxu1 %v2648_v34  ;;  %3339 = vmatmul.mubr.f32.gmra.mrb[18].mxu0 %v2648_v34 }
 0x220   : > { %2759 = vmatprep.mubr.f32.mxu1 %v6662_v7  ;;  %3449 = vmatprep.mubr.f32.mxu0 %v6662_v7 }
 0x223   : > { %2761 = vmatmul.mubr.f32.vlgmr.msra.gmra.mrb[16].mxu1 %v6232_v13  ;;  %3451 = vmatmul.mubr.f32.vlgmr.msra.gmra.mrb[12].mxu0 %v6232_v13 }
 0x224   : > { %4602 = vmatpush1.bf16.msra.mxu1 %v6665_v51  ;;  %2766 = vmatprep.mubr.f32.mxu1 %v6662_v7 }
 0x225   : > { %3456 = vmatprep.mubr.f32.mxu0 %v6662_v7  ;;  %4604 = vmatprep.subr.bf16.mxu1 %v6666_v43 }
 0x226   : > { %4650 = vmatpush1.bf16.msra.mxu0 %v6667_v19 }
 0x227   : > { %2768 = vmatmul.mubr.f32.gmra.mrb[18].mxu1 %v6228_v14  ;;  %3458 = vmatmul.mubr.f32.gmra.mrb[14].mxu0 %v6228_v14 }
 0x228   : > { %2773 = vmatprep.mubr.f32.mxu1 %v6662_v7  ;;  %3463 = vmatprep.mubr.f32.mxu0 %v6662_v7 }
 0x229   : > { %4606 = vmatpush1.bf16.msra.mxu1 %v6668_v46  ;;  %4652 = vmatprep.subr.bf16.mxu0 %v6669_v30 }
 0x22a   : > { %4654 = vmatpush1.bf16.msra.mxu0 %v6670_v21  ;;  %4608 = vmatprep.subr.bf16.mxu1 %v6006_v52 }
 0x22b   : > { %2775 = vmatmul.mubr.f32.gmra.mrb[20].mxu1 %v6247_v12  ;;  %3465 = vmatmul.mubr.f32.gmra.mrb[16].mxu0 %v6247_v12 }
 0x22c   : > { %2780 = vmatprep.mubr.f32.mxu1 %v6662_v7  ;;  %3470 = vmatprep.mubr.f32.mxu0 %v6662_v7 }
 0x22d   : > { %4656 = vmatprep.subr.bf16.mxu0 %v6022_v39 }
 0x22f   : > { %2782 = vmatmul.mubr.f32.gmra.mrb[22].mxu1 %v6245_v42  ;;  %3472 = vmatmul.mubr.f32.gmra.mrb[18].mxu0 %v6245_v42 }
 0x230   : > { %2868 = vmatprep.mubr.f32.mxu1 %v6662_v7  ;;  %3558 = vmatprep.mubr.f32.mxu0 %v6662_v7 }
 0x233   : > { %2871 = vmatmul.mubr.f32.vlgmr.msra.gmra.mrb[16].mxu1 %v6238_v3  ;;  %3561 = vmatmul.mubr.f32.vlgmr.msra.gmra.mrb[12].mxu0 %v6238_v3 }
 0x234   : > { %4610 = vmatpush1.bf16.msra.mxu1 %v6012_v33  ;;  %2876 = vmatprep.mubr.f32.mxu1 %v6662_v7 }
 0x235   : > { %3566 = vmatprep.mubr.f32.mxu0 %v6662_v7  ;;  %4612 = vmatprep.subr.bf16.mxu1 %v6028_v16 }
 0x236   : > { %4658 = vmatpush1.bf16.msra.mxu0 %v6044_v53 }
 0x237   : > { %2879 = vmatmul.mubr.f32.gmra.mrb[18].mxu1 %v6235_v57  ;;  %3569 = vmatmul.mubr.f32.gmra.mrb[14].mxu0 %v6235_v57 }
 0x238   : > { %2884 = vmatprep.mubr.f32.mxu1 %v6662_v7  ;;  %3574 = vmatprep.mubr.f32.mxu0 %v6662_v7 }
 0x239   : > { %4614 = vmatpush1.bf16.msra.mxu1 %v6038_v11  ;;  %4660 = vmatprep.subr.bf16.mxu0 %v6058_v56 }
 0x23a   : > { %4662 = vmatpush1.bf16.msra.mxu0 %v6074_v61  ;;  %4616 = vmatprep.subr.bf16.mxu1 %v6170_v38 }
 0x23b   : > { %2887 = vmatmul.mubr.f32.gmra.mrb[20].mxu1 %v6253_v18  ;;  %3577 = vmatmul.mubr.f32.gmra.mrb[16].mxu0 %v6253_v18 }
 0x23c   : > { %2892 = vmatprep.mubr.f32.mxu1 %v6662_v7  ;;  %3582 = vmatprep.mubr.f32.mxu0 %v6662_v7 }
 0x23d   : > { %4664 = vmatprep.subr.bf16.mxu0 %v6192_v58 }
 0x23f   : > { %2895 = vmatmul.mubr.f32.gmra.mrb[22].mxu1 %v6258_v55  ;;  %3585 = vmatmul.mubr.f32.gmra.mrb[18].mxu0 %v6258_v55 }
 0x240   : > { %2973 = vmatprep.mubr.f32.mxu1 %v6662_v7  ;;  %3663 = vmatprep.mubr.f32.mxu0 %v6662_v7 }
 0x243   : > { %2977 = vmatmul.mubr.f32.vlgmr.msra.gmra.mrb[16].mxu1 %v6243_v6  ;;  %3667 = vmatmul.mubr.f32.vlgmr.msra.gmra.mrb[12].mxu0 %v6243_v6 }
 0x244   : > { %4618 = vmatpush1.bf16.msra.mxu1 %v6176_v31  ;;  %2982 = vmatprep.mubr.f32.mxu1 %v6662_v7 }
 0x245   : > { %3672 = vmatprep.mubr.f32.mxu0 %v6662_v7  ;;  %4620 = vmatprep.subr.bf16.mxu1 %v6186_v45  ;;  %v3922_v45 = vld [vmem:[#allocation8 + $0x2] ss:$4 sm:$0xf] }
 0x246   : > { %4666 = vmatpush1.bf16.msra.mxu0 %v6205_v37 }
 0x247   : > { %2986 = vmatmul.mubr.f32.gmra.mrb[18].mxu1 %v6250_v9  ;;  %3676 = vmatmul.mubr.f32.gmra.mrb[14].mxu0 %v6250_v9 }
 0x248   : > { %2991 = vmatprep.mubr.f32.mxu1 %v6662_v7  ;;  %3681 = vmatprep.mubr.f32.mxu0 %v6662_v7 }
 0x249   : > { %4622 = vmatpush1.bf16.msra.mxu1 %v6198_v44  ;;  %4668 = vmatprep.subr.bf16.mxu0 %v6208_v25 }
 0x24a   : > { %4670 = vmatpush1.bf16.msra.mxu0 %v6671_v24  ;;  %4624 = vmatprep.subr.bf16.mxu1 %v6006_v52  ;;  %v3924_v52 = vlaneseq }
 0x24b   : > { %2995 = vmatmul.mubr.f32.gmra.mrb[20].mxu1 %v6263_v8  ;;  %3685 = vmatmul.mubr.f32.gmra.mrb[16].mxu0 %v6263_v8 }
 0x24c   : > { %3000 = vmatprep.mubr.f32.mxu1 %v6662_v7  ;;  %3690 = vmatprep.mubr.f32.mxu0 %v6662_v7 }
 0x24d   : > { %4672 = vmatprep.subr.bf16.mxu0 %v6022_v39 }
 0x24f   : > { %3004 = vmatmul.mubr.f32.gmra.mrb[22].mxu1 %v6272_v35  ;;  %3694 = vmatmul.mubr.f32.gmra.mrb[18].mxu0 %v6272_v35 }
 0x250   : > { %3098 = vmatprep.mubr.f32.mxu1 %v6662_v7  ;;  %3788 = vmatprep.mubr.f32.mxu0 %v6662_v7 }
 0x253   : > { %3100 = vmatmul.mubr.f32.vlgmr.msra.gmra.mrb[16].mxu1 %v6232_v13  ;;  %3790 = vmatmul.mubr.f32.vlgmr.msra.gmra.mrb[12].mxu0 %v6232_v13 }
 0x254   : > { %4626 = vmatpush1.bf16.msra.mxu1 %v6012_v33  ;;  %3105 = vmatprep.mubr.f32.mxu1 %v6662_v7 }
 0x255   : > { %3795 = vmatprep.mubr.f32.mxu0 %v6662_v7  ;;  %4628 = vmatprep.subr.bf16.mxu1 %v6028_v16  ;;  %v3925_v16 = vshrl.u32 %v3924_v52, 7 }
 0x256   : > { %4674 = vmatpush1.bf16.msra.mxu0 %v6044_v53 }
 0x257   : > { %3107 = vmatmul.mubr.f32.gmra.mrb[18].mxu1 %v6228_v14  ;;  %3797 = vmatmul.mubr.f32.gmra.mrb[14].mxu0 %v6228_v14  ;;  %v3926_v32 = vsub.s32 0, %v3925_v16  ;;  %v3930_v10 = vsub.s32 1, %v3925_v16 }
 0x258   : > { %3112 = vmatprep.mubr.f32.mxu1 %v6662_v7  ;;  %3802 = vmatprep.mubr.f32.mxu0 %v6662_v7 }
 0x259   : > { %4630 = vmatpush1.bf16.msra.mxu1 %v6038_v11  ;;  %4676 = vmatprep.subr.bf16.mxu0 %v6058_v56  ;;  %v6428_v1 = vrot.slane %v3918_v62, %v3926_v32  ;;  %v6432_v26 = vrot.slane %v3918_v62, %v3930_v10  ;;  %v6447_v36 = vrot.slane %v3922_v45, %v3926_v32 }
 0x25a   : > { %4678 = vmatpush1.bf16.msra.mxu0 %v6074_v61  ;;  %4679 = vmatprep.subr.bf16.mxu1 %v6022_v39  ;;  %v6452_v59 = vrot.slane %v3922_v45, %v3930_v10 }
 0x25b   : > { %3114 = vmatmul.mubr.f32.gmra.mrb[20].mxu1 %v6247_v12  ;;  %3804 = vmatmul.mubr.f32.gmra.mrb[16].mxu0 %v6247_v12 }
 0x25c   : > { %3119 = vmatprep.mubr.f32.mxu1 %v6662_v7  ;;  %3809 = vmatprep.mubr.f32.mxu0 %v6662_v7 }
 0x25f   : > { %3121 = vmatmul.mubr.f32.gmra.mrb[22].mxu1 %v6245_v42  ;;  %3811 = vmatmul.mubr.f32.gmra.mrb[18].mxu0 %v6245_v42 }
 0x260   : > { %3199 = vmatprep.mubr.f32.mxu1 %v6662_v7  ;;  %3889 = vmatprep.mubr.f32.mxu0 %v6662_v7 }
 0x263   : > { %3201 = vmatmul.mubr.f32.vlgmr.msra.gmra.mrb[16].mxu1 %v6232_v13  ;;  %3891 = vmatmul.mubr.f32.vlgmr.msra.gmra.mrb[12].mxu0 %v6232_v13 }
 0x264   : > { %4681 = vmatpush1.bf16.msra.mxu1 %v6044_v53  ;;  %3206 = vmatprep.mubr.f32.mxu1 %v6662_v7  ;;  %v3934_v53 = vsub.s32 2, %v3925_v16 }
 0x265   : > { %4680 = vmatprep.subr.bf16.mxu1 %v6058_v56  ;;  %v3938_v56 = vsub.s32 3, %v3925_v16 }
 0x266   : > { %v6430_v48 = vrot.slane %v3918_v62, %v3934_v53  ;;  %v6450_v50 = vrot.slane %v3922_v45, %v3934_v53 }
 0x267   : > { %3208 = vmatmul.mubr.f32.gmra.mrb[18].mxu1 %v6228_v14  ;;  %v6434_v41 = vrot.slane %v3918_v62, %v3938_v56  ;;  %v6455_v6 = vrot.slane %v3922_v45, %v3938_v56 }
 0x268   : > { %3213 = vmatprep.mubr.f32.mxu1 %v6662_v7  ;;  %4682 = vmatpush1.bf16.msra.mxu1 %v6074_v61  ;;  %v3920_v61 = vld [vmem:[#allocation8 + $0x1] ss:$4 sm:$0xf] }
 0x269   : > { %v6436_v17 = vrot.slane %v3920_v61, %v3926_v32  ;;  %v6438_v38 = vrot.slane %v3920_v61, %v3934_v53  ;;  %v3968_v44 = vrot.slane %v3920_v61, %v3930_v10  ;;  %v6440_v37 = vrot.slane %v3920_v61, %v3938_v56 }
 0x26b   : > { %3215 = vmatmul.mubr.f32.gmra.mrb[20].mxu1 %v6247_v12 }
 0x26c   : > { %3220 = vmatprep.mubr.f32.mxu1 %v6662_v7 }
 0x26f   : > { %3222 = vmatmul.mubr.f32.gmra.mrb[22].mxu1 %v6245_v42 }
 0x270   : > { %3896 = vmatprep.mubr.f32.mxu1 %v6662_v7 }
 0x273   : > { %3898 = vmatmul.mubr.f32.vlgmr.msra.gmra.mrb[24].mxu1 %v6228_v14 }
 0x274   : > { %3903 = vmatprep.mubr.f32.mxu1 %v6662_v7 }
 0x277   : > { %3905 = vmatmul.mubr.f32.gmra.mrb[26].mxu1 %v6247_v12 }
 0x278   : > { %3910 = vmatprep.mubr.f32.mxu1 %v6662_v7 }
 0x27b   : > { %3912 = vmatmul.mubr.f32.gmra.mrb[28].mxu1 %v6245_v42 }
 0x32a   : > { %v6416_v33 = vpop.f32.mrb[14].mxu0 }
 0x32b   : > { %v6418_v39 = vpop.f32.mrb[15].mxu0 }
 0x32e   : > { %v6420_v11 = vpop.f32.mrb[16].mxu0 }
 0x32f   : > { %v6422_v27 = vpop.f32.mrb[17].mxu0 }
 0x332   : > { %v6424_v54 = vpop.f32.mrb[18].mxu0 }
 0x333   : > { %v6426_v20 = vpop.f32.mrb[19].mxu0 }
 0x336   : > { %v3202_v31 = vpop.f32.mrb[16].mxu1  ;;  %v3892_v58 = vpop.f32.mrb[12].mxu0 }
 0x337   : > { %v3944_v25 = vsub.f32 %v3202_v31, %v6428_v1  ;;  %v3946_v14 = vsub.f32 %v3892_v58, %v6430_v48  ;;  %v3204_v2 = vpop.f32.mrb[17].mxu1  ;;  %v3894_v5 = vpop.f32.mrb[13].mxu0 }
 0x338   : > { %v3945_v47 = vsub.f32 %v3204_v2, %v6432_v26  ;;  %v3947_v29 = vsub.f32 %v3894_v5, %v6434_v41 }
 0x339   : > { %v3981_v13 = vmul.f32 %v6436_v17, %v3944_v25  ;;  %v3983_v57 = vmul.f32 %v6438_v38, %v3946_v14 }
 0x33a   : > { %v3982_v3 = vmul.f32 %v3968_v44, %v3945_v47  ;;  %v3984_v22 = vmul.f32 %v6440_v37, %v3947_v29  ;;  %v3209_v42 = vpop.f32.mrb[18].mxu1 }
 0x33b   : > { %v3997_v12 = vmul.f32 %v3981_v13, %v3981_v13  ;;  %v3999_v9 = vmul.f32 %v3983_v57, %v3983_v57  ;;  %v3948_v18 = vsub.f32 %v3209_v42, %v6428_v1  ;;  %v3211_v23 = vpop.f32.mrb[19].mxu1 }
 0x33c   : > { %v3998_v55 = vmul.f32 %v3982_v3, %v3982_v3  ;;  %v4000_v40 = vmul.f32 %v3984_v22, %v3984_v22  ;;  %v3949_v60 = vsub.f32 %v3211_v23, %v6432_v26  ;;  %v4084_v3 = vpop.permute.xlu0 %4083 }
 0x33d   : > { %v4034_v8 = vsub.f32 %v6447_v36, %v3997_v12  ;;  %v4036_v7 = vsub.f32 %v6450_v50, %v3999_v9  ;;  %v3985_v28 = vmul.f32 %v6436_v17, %v3948_v18 }
 0x33e   : > { %v4035_v49 = vsub.f32 %v6452_v59, %v3998_v55  ;;  %v4037_v35 = vsub.f32 %v6455_v6, %v4000_v40  ;;  %v3986_v4 = vmul.f32 %v3968_v44, %v3949_v60  ;;  %v3216_v15 = vpop.f32.mrb[20].mxu1 }
 0x33f   : > { %v4050_v0 = vmul.f32 1.442695, %v4034_v8  ;;  %v4054_v34 = vmul.f32 1.442695, %v4036_v7  ;;  %v4001_v63 = vmul.f32 %v3985_v28, %v3985_v28  ;;  %v3952_v51 = vsub.f32 %v3216_v15, %v6428_v1  ;;  %v3218_v43 = vpop.f32.mrb[21].mxu1 }
 0x340   : > { %v4052_v19 = vmul.f32 1.442695, %v4035_v49  ;;  %v4056_v46 = vmul.f32 1.442695, %v4037_v35  ;;  %v4002_v30 = vmul.f32 %v3986_v4, %v3986_v4  ;;  %v3953_v21 = vsub.f32 %v3218_v43, %v6432_v26  ;;  %v6486_v15 = vpop.permute.xlu0 %4087 }
 0x341   : > { %4976 = vpow2.f32 %v4050_v0  ;;  %v4038_v24 = vsub.f32 %v6447_v36, %v4001_v63  ;;  %v3989_v52 = vmul.f32 %v6436_v17, %v3952_v51 }
 0x342   : > { %4978 = vpow2.f32 %v4054_v34  ;;  %v4039_v16 = vsub.f32 %v6452_v59, %v4002_v30  ;;  %v3990_v32 = vmul.f32 %v3968_v44, %v3953_v21  ;;  %v3223_v53 = vpop.f32.mrb[22].mxu1 }
 0x343   : > { %4980 = vpow2.f32 %v4052_v19  ;;  %v4058_v62 = vmul.f32 1.442695, %v4038_v24  ;;  %v4005_v10 = vmul.f32 %v3989_v52, %v3989_v52  ;;  %v3956_v56 = vsub.f32 %v3223_v53, %v6428_v1  ;;  %v3225_v61 = vpop.f32.mrb[23].mxu1  ;;  %v4092_v24 = vpop.permute.xlu1 %4091 }
 0x344   : > { %4982 = vpow2.f32 %v4056_v46  ;;  %v4060_v31 = vmul.f32 1.442695, %v4039_v16  ;;  %v4006_v45 = vmul.f32 %v3990_v32, %v3990_v32  ;;  %v3957_v58 = vsub.f32 %v3225_v61, %v6432_v26 }
 0x345   : > { %4984 = vpow2.f32 %v4058_v62  ;;  %v4042_v25 = vsub.f32 %v6447_v36, %v4005_v10  ;;  %v3993_v14 = vmul.f32 %v6436_v17, %v3956_v56 }
 0x346   : > { %4986 = vpow2.f32 %v4060_v31  ;;  %v4043_v2 = vsub.f32 %v6452_v59, %v4006_v45  ;;  %v3994_v5 = vmul.f32 %v3968_v44, %v3957_v58  ;;  %v3899_v47 = vpop.f32.mrb[24].mxu1 }
 0x347   : > { %v4066_v29 = vmul.f32 1.442695, %v4042_v25  ;;  %v4009_v13 = vmul.f32 %v3993_v14, %v3993_v14  ;;  %v4691_v1 = vadd.f32 %v3899_v47, %v6416_v33  ;;  %v3901_v57 = vpop.f32.mrb[25].mxu1 }
 0x348   : > { %v4068_v22 = vmul.f32 1.442695, %v4043_v2  ;;  %v4010_v42 = vmul.f32 %v3994_v5, %v3994_v5  ;;  %v4692_v26 = vadd.f32 %v3901_v57, %v6418_v39 }
 0x349   : > { %4988 = vpow2.f32 %v4066_v29  ;;  %v4046_v12 = vsub.f32 %v6447_v36, %v4009_v13  ;;  %v3950_v17 = vsub.f32 %v4691_v1, %v6430_v48 }
 0x34a   : > { %4990 = vpow2.f32 %v4068_v22  ;;  %v4047_v44 = vsub.f32 %v6452_v59, %v4010_v42  ;;  %v3951_v9 = vsub.f32 %v4692_v26, %v6434_v41  ;;  %v3906_v18 = vpop.f32.mrb[26].mxu1 }
 0x34b   : > { %v4977_v23 = vpop.eup %4976  ;;  %v4074_v33 = vmul.f32 1.442695, %v4046_v12  ;;  %v3987_v55 = vmul.f32 %v6438_v38, %v3950_v17  ;;  %v4693_v40 = vadd.f32 %v3906_v18, %v6420_v11  ;;  %v3908_v39 = vpop.f32.mrb[27].mxu1 }
 0x34c   : > { %v4979_v60 = vpop.eup %4978  ;;  %v4076_v8 = vmul.f32 1.442695, %v4047_v44  ;;  %v3988_v36 = vmul.f32 %v6440_v37, %v3951_v9  ;;  %v4098_v7 = vmul.f32 %v4977_v23, %v4084_v3  ;;  %v4694_v28 = vadd.f32 %v3908_v39, %v6422_v27 }
 0x34d   : > { %v4981_v49 = vpop.eup %4980  ;;  %4992 = vpow2.f32 %v4074_v33  ;;  %v4003_v59 = vmul.f32 %v3987_v55, %v3987_v55  ;;  %v3954_v35 = vsub.f32 %v4693_v40, %v6430_v48  ;;  %v4100_v4 = vmul.f32 %v4979_v60, %v4084_v3 }
 0x34e   : > { %v4983_v0 = vpop.eup %4982  ;;  %4994 = vpow2.f32 %v4076_v8  ;;  %v4004_v11 = vmul.f32 %v3988_v36, %v3988_v36  ;;  %v4099_v34 = vmul.f32 %v4981_v49, %v4084_v3  ;;  %4114 = vst [vmem:[%s6488_s10] sm:$0xff] %v4098_v7  ;;  %v3955_v27 = vsub.f32 %v4694_v28, %v6434_v41  ;;  %v3913_v63 = vpop.f32.mrb[28].mxu1 }
 0x34f   : > { %v4985_v51 = vpop.eup %4984  ;;  %v4040_v43 = vsub.f32 %v6450_v50, %v4003_v59  ;;  %v3991_v19 = vmul.f32 %v6438_v38, %v3954_v35  ;;  %v4101_v46 = vmul.f32 %v4983_v0, %v4084_v3  ;;  %4116 = vst [vmem:[%s6488_s10 + $0x10] sm:$0xff] %v4100_v4  ;;  %v4695_v30 = vadd.f32 %v3913_v63, %v6424_v54  ;;  %v3915_v21 = vpop.f32.mrb[29].mxu1 }
 0x350   : > { %v4987_v52 = vpop.eup %4986  ;;  %v4041_v16 = vsub.f32 %v6455_v6, %v4004_v11  ;;  %4115 = vst [vmem:[%s6488_s10 + $0x8] sm:$0xff] %v4099_v34  ;;  %v3992_v32 = vmul.f32 %v6440_v37, %v3955_v27  ;;  %v4102_v53 = vmul.f32 %v4985_v51, %v6486_v15  ;;  %v4696_v62 = vadd.f32 %v3915_v21, %v6426_v20 }
 0x351   : > { %v4062_v10 = vmul.f32 1.442695, %v4040_v43  ;;  %v4007_v56 = vmul.f32 %v3991_v19, %v3991_v19  ;;  %4118 = vst.msk [vmem:[%s6488_s10 + $0x18] sm:$0xff] %vm4117_vm12, %v4101_v46  ;;  %v3958_v54 = vsub.f32 %v4695_v30, %v6430_v48  ;;  %v4103_v61 = vmul.f32 %v4987_v52, %v6486_v15 }
 0x352   : > { %v4064_v31 = vmul.f32 1.442695, %v4041_v16  ;;  %v4008_v45 = vmul.f32 %v3992_v32, %v3992_v32  ;;  %4119 = vst [vmem:[%s6488_s10 + $0x20] sm:$0xff] %v4102_v53  ;;  %v3959_v58 = vsub.f32 %v4696_v62, %v6434_v41  ;;  %v4096_v41 = vpop.permute.xlu1 %4095 }
 0x353   : > { %v4989_v25 = vpop.eup %4988  ;;  %4996 = vpow2.f32 %v4062_v10  ;;  %v4044_v14 = vsub.f32 %v6450_v50, %v4007_v56  ;;  %v3995_v20 = vmul.f32 %v6438_v38, %v3958_v54  ;;  %4120 = vst [vmem:[%s6488_s10 + $0x28] sm:$0xff] %v4103_v61 }
 0x354   : > { %v4991_v2 = vpop.eup %4990  ;;  %4998 = vpow2.f32 %v4064_v31  ;;  %v4045_v48 = vsub.f32 %v6455_v6, %v4008_v45  ;;  %v3996_v5 = vmul.f32 %v6440_v37, %v3959_v58  ;;  %v4106_v47 = vmul.f32 %v4989_v25, %v4092_v24 }
 0x355   : > { %v4070_v29 = vmul.f32 1.442695, %v4044_v14  ;;  %v4011_v13 = vmul.f32 %v3995_v20, %v3995_v20  ;;  %v4107_v1 = vmul.f32 %v4991_v2, %v4092_v24 }
 0x356   : > { %v4072_v57 = vmul.f32 1.442695, %v4045_v48  ;;  %v4012_v3 = vmul.f32 %v3996_v5, %v3996_v5  ;;  %4123 = vst [vmem:[%s6488_s10 + $0x40] sm:$0xff] %v4106_v47 }
 0x357   : > { %v4993_v22 = vpop.eup %4992  ;;  %5000 = vpow2.f32 %v4070_v29  ;;  %v4048_v38 = vsub.f32 %v6450_v50, %v4011_v13  ;;  %4124 = vst [vmem:[%s6488_s10 + $0x48] sm:$0xff] %v4107_v1 }
 0x358   : > { %v4995_v42 = vpop.eup %4994  ;;  %5002 = vpow2.f32 %v4072_v57  ;;  %v4049_v37 = vsub.f32 %v6455_v6, %v4012_v3  ;;  %v4110_v26 = vmul.f32 %v4993_v22, %v4096_v41 }
 0x359   : > { %v4078_v12 = vmul.f32 1.442695, %v4048_v38  ;;  %v4111_v17 = vmul.f32 %v4995_v42, %v4096_v41 }
 0x35a   : > { %v4080_v44 = vmul.f32 1.442695, %v4049_v37  ;;  %4127 = vst [vmem:[%s6488_s10 + $0x60] sm:$0xff] %v4110_v26 }
 0x35b   : > { %5004 = vpow2.f32 %v4078_v12  ;;  %4128 = vst [vmem:[%s6488_s10 + $0x68] sm:$0xff] %v4111_v17 }
 0x35c   : > { %5006 = vpow2.f32 %v4080_v44 }
 0x35d   : > { %v4997_v50 = vpop.eup %4996 }
 0x35e   : > { %v4999_v9 = vpop.eup %4998  ;;  %v4104_v18 = vmul.f32 %v4997_v50, %v6486_v15 }
 0x35f   : > { %v4105_v23 = vmul.f32 %v4999_v9, %v6486_v15 }
 0x360   : > { %4121 = vst [vmem:[%s6488_s10 + $0x30] sm:$0xff] %v4104_v18 }
 0x361   : > { %v5001_v6 = vpop.eup %5000  ;;  %4122 = vst.msk [vmem:[%s6488_s10 + $0x38] sm:$0xff] %vm4117_vm12, %v4105_v23 }
 0x362   : > { %v5003_v33 = vpop.eup %5002  ;;  %v4108_v55 = vmul.f32 %v5001_v6, %v4092_v24 }
 0x363   : > { %v4109_v40 = vmul.f32 %v5003_v33, %v4092_v24 }
 0x364   : > { %4125 = vst [vmem:[%s6488_s10 + $0x50] sm:$0xff] %v4108_v55 }
 0x365   : > { %v5005_v39 = vpop.eup %5004  ;;  %4126 = vst.msk [vmem:[%s6488_s10 + $0x58] sm:$0xff] %vm4117_vm12, %v4109_v40 }
 0x366   : > { %v5007_v60 = vpop.eup %5006  ;;  %v4112_v8 = vmul.f32 %v5005_v39, %v4096_v41 }
 0x367   : > { %v4113_v36 = vmul.f32 %v5007_v60, %v4096_v41 }
 0x368   : > { %4129 = vst [vmem:[%s6488_s10 + $0x70] sm:$0xff] %v4112_v8 }
 0x369   : > { %4130 = vst.msk [vmem:[%s6488_s10 + $0x78] sm:$0xff] %vm4117_vm12, %v4113_v36 }
 0x36a   : > { %5139 = shalt.err (!%p5136_p0)
}
 0x36b   : > { %s5140_s15 = scalar_lea.hbm %s6531_s27, 2048  ;;  %s5144_s30 = scalar_lea.hbm %s6590_s5, 4096 }
 0x36c   : > { %p5141_p4 = scmp.ne.s32.totalorder %s6531_s27, %s5140_s15  ;;  %p5145_p12 = scmp.lt.u32.totalorder %s6531_s27, %s6590_s5 }
 0x36d   : > { %p5146_p1 = scmp.lt.u32.totalorder %s5144_s30, %s5140_s15  ;;  %p5148_p13 = scmp.lt.u32.totalorder %s5140_s15, %s6531_s27 }
 0x36e   : > { %p5142_p8 = pnand %p5141_p4, %p5417_p3 }
 0x36f   : > { %p5147_p7 = por %p5146_p1, %p5145_p12 }
 0x370   : > { %p5143_p2 = pneg %p5142_p8 }
 0x371   : > { %p5149_p6 = por %p5148_p13, %p5147_p7 }
 0x373   : > { %p5150_p10 = pnand %p5149_p6, %p5143_p2 }
 0x375   : > { %5153 = shalt.err (!%p5150_p10)
}
 0x376   : > { %s5231_s10 = smov 512   ;;  %s5232_s6 = smov 32  }
 0x377   : > { %4877 = dma.vmem_to_hbm [thread:$0]  (%p5417_p3), %s6533_s12, 2048, %s6531_s27, %s4132_s21, %s5231_s10, %s5231_s10, %s5232_s6  }
 0x378 PF: > { %s6672_s17 = sld [smem:[#allocation15_spill]]  ;;  %s4163_s24 = sand.u32 1, %s5196_s18  }
 0x379   : > { %p6674_p5 = scmp.ge.s32.totalorder %s5216_s23, 2  ;;  %s4164_s29 = scalar_lea.sflag [#allocation4], %s4163_s24 }
 0x37e   : > { %p6673_p11 = scmp.ne.s32.totalorder %s6672_s17, 0 }
 0x380   : > { %p4894_p9 = pnand %p6674_p5, %p6673_p11 }
 0x382   : > { %5191 = dma.done.wait (!%p4894_p9), %s4164_s29, 2048  }
 0x383   : > { %5193 = vsyncadd (!%p4894_p9), %s4164_s29, 4294965248  ;;  %s23_s23 = sadd.s32 1, %s5216_s23   ;;  %s6675_s18 = smov %s5200_s19 }
 0x384   : > { %p20_p0 = scmp.ge.s32.totalorder %s23_s23, 4   ;;  %s6676_s19 = smov %s5204_s20 }
 0x385   : > { %s6677_s20 = smov %s5426_s14  ;;  %s6678_s21 = smov %s5212_s22 }
 0x386   : > { %s6679_s22 = smov %s6681_s1  ;;  %22 = sbr.rel (!%p20_p0) target bundleno = 10 (0xa), region = 99 }
 0x38d   :  { %4169 = vsyncpa [#allocation3], 1 }
 0x38e   :  { %4171 = vsyncpa [#allocation3 + $0x1], 1 }
 0x38f   :  { %4172 = vsyncpa [#allocation6], 1 }
 0x390   :  { %4173 = vsyncpa [#allocation9], 1 }
 0x391   :  { %4174 = vsyncpa [#allocation4], 1 }
 0x392   :  { %4176 = vsyncpa [#allocation4 + $0x1], 1 }

</bundles_post_ra>
